<compile_context>
chip_gen: v5e
topology: v5e:2x2
jax: 0.10.0
libtpu: 0.0.40
codegen_flags: <defaults>
</compile_context>

<pallas_src>
import numpy as np
import jax
import jax.numpy as jnp
from jax import lax
from jax.experimental import pallas as pl
from jax.experimental.pallas import tpu as pltpu

HID = 32            # LSTM hidden size
NUM_ACTIONS = 6     # action_space.n (synthetic)
FEAT = 16 * 11 * 11

# bf16 matmul operands (per perf review); set to jnp.float32 for exact 1e-3 match.
MATMUL_DTYPE = jnp.bfloat16

_VMEM = pl.BlockSpec(memory_space=pltpu.MemorySpace.VMEM)


def _sigmoid(x):
    # exp on EUP + approximate reciprocal on EUP -> no VALU divide on the
    # serial recurrence path.
    return pl.reciprocal(1.0 + jnp.exp(-x), approx=True)


# ----------------------------------------------------------------------------
# Fused Pallas kernel: conv1 -> conv2 -> LSTM(4 steps) -> critic/actor heads
# ----------------------------------------------------------------------------
def fused_forward_kernel(apH_ref, w1aT_ref, w2T_ref, b2_ref, wih_ref,
                         whhT_ref, bl_ref, h0_ref, c0_ref, whd_ref, bhd_ref,
                         out_ref, gT_ref, y2f_ref):
    f32 = jnp.float32
    mm = MATMUL_DTYPE

    # ---- conv1: all 4 streams x all 9 conv2 taps in ONE GEMM ---------------
    # (128, 40) @ (40, 1152) -> (128, 1152); lane index = 128*tap + conv2 pos.
    # apH column k=36 is the "valid" indicator -> bias only on real positions,
    # exact zeros on conv2's padding positions.
    g_all = jnp.dot(w1aT_ref[...], apH_ref[...], preferred_element_type=f32)
    g_all = jnp.maximum(g_all, 0.0)

    # Restack taps from lanes to rows (9 tile-aligned block copies) so that
    # conv2 becomes a single deep-K GEMM.
    for t in range(9):
        gT_ref[128 * t:128 * (t + 1), :] = g_all[:, 128 * t:128 * (t + 1)]

    # ---- conv2: ONE (64, 1152) @ (1152, 128) GEMM --------------------------
    y2T = jnp.dot(w2T_ref[...], gT_ref[...].astype(mm),
                  preferred_element_type=f32)
    y2T = jnp.maximum(y2T + b2_ref[...], 0.0)       # (64, 128); rows = 4*c2 + s

    # ---- repack to PyTorch's per-stream channel-major flatten --------------
    # y2f[s, 128*c2 + pos] = y2T[4*c2 + s, pos]; padded pos 121..127 hit
    # zero rows of wih_big so their junk never contributes.
    y2f_ref[...] = jnp.zeros_like(y2f_ref)
    for c2 in range(16):
        y2f_ref[0:4, 128 * c2:128 * (c2 + 1)] = y2T[4 * c2:4 * c2 + 4, :]

    # ---- LSTM input projection for all 4 timesteps in ONE GEMM -------------
    gx = jnp.dot(y2f_ref[...].astype(mm), wih_ref[...],
                 preferred_element_type=f32)        # (8, 128); rows 0..3 = steps

    # ---- LSTM recurrence (seq=4, batch=1), row-vector layout ---------------
    # Gate order i, f, g, o (PyTorch); gates sliced along lanes.
    h = h0_ref[...]          # (1, 32)
    c = c0_ref[...]          # (1, 32)
    whhT = whhT_ref[...]     # (32, 128)
    b = bl_ref[...]          # (1, 128)
    for t in range(4):
        g = gx[t:t + 1, :] + b + jnp.dot(h, whhT, preferred_element_type=f32)
        i = _sigmoid(g[:, 0 * HID:1 * HID])
        f = _sigmoid(g[:, 1 * HID:2 * HID])
        gg = jnp.tanh(g[:, 2 * HID:3 * HID])
        o = _sigmoid(g[:, 3 * HID:4 * HID])
        c = f * c + i * gg
        h = o * jnp.tanh(c)

    # ---- fused lane-dense heads: lane 0 = critic, lanes 1..6 = actor -------
    out_ref[...] = jnp.dot(h, whd_ref[...], preferred_element_type=f32) + bhd_ref[...]


# ----------------------------------------------------------------------------
# Static gather tables: conv2-tap x conv1-tap composed indexing into the
# zero-padded 44x44 input frame (pure numpy, no data dependence).
# ----------------------------------------------------------------------------
def _build_conv_gather_tables():
    idx = np.zeros((9, 9, 121), np.int32)     # [conv2 tap, conv1 tap, conv2 pos]
    mask = np.zeros((9, 121), np.float32)     # 1 where the conv1 position is real
    for ki2 in range(3):
        for kj2 in range(3):
            t = ki2 * 3 + kj2
            for h2 in range(11):
                for w2 in range(11):
                    p2 = h2 * 11 + w2
                    h1 = 2 * h2 + ki2 - 1
                    w1 = 2 * w2 + kj2 - 1
                    if 0 <= h1 < 21 and 0 <= w1 < 21:
                        mask[t, p2] = 1.0
                        for ki1 in range(3):
                            for kj1 in range(3):
                                j = ki1 * 3 + kj1
                                hi = 2 * h1 + ki1          # padded coords (+1 pad)
                                wi = 2 * w1 + kj1
                                idx[t, j, p2] = hi * 44 + wi
    return idx, mask


_IDX, _MASK = _build_conv_gather_tables()


def _build_patches(inputs):
    """inputs (4,1,42,42) -> apH (40, 1152): pre-gathered conv1 input patches
    for every (conv2 tap, conv2 output position); conv padding baked in."""
    x = inputs.reshape(4, 42, 42)
    xpad = jnp.pad(x, ((0, 0), (1, 1), (1, 1))).reshape(4, 44 * 44)
    vals = xpad[:, _IDX]                                   # (4, 9, 9, 121) [s,t,j,p2]
    vals = vals * jnp.asarray(_MASK)[None, :, None, :]     # zero conv2-padding rows
    core = jnp.transpose(vals, (0, 2, 1, 3)).reshape(36, 9, 121)   # k = 9*s + j
    apH = jnp.concatenate([core, jnp.asarray(_MASK)[None]], axis=0)  # row 36 = valid
    apH = jnp.pad(apH, ((0, 3), (0, 0), (0, 7))).reshape(40, 9 * 128)
    return apH.astype(MATMUL_DTYPE)


# ----------------------------------------------------------------------------
# Full forward (matches ActorCritic.forward semantics)
# ----------------------------------------------------------------------------
def actor_critic_forward(inputs, h0, c0, P):
    apH = _build_patches(inputs)
    out = pl.pallas_call(
        fused_forward_kernel,
        out_shape=jax.ShapeDtypeStruct((1, 128), jnp.float32),
        in_specs=[_VMEM] * 11,
        out_specs=_VMEM,
        scratch_shapes=[pltpu.VMEM((9 * 128, 128), jnp.float32),   # restacked conv1 taps
                        pltpu.VMEM((8, 2048), jnp.float32)],       # LSTM-input layout
    )(apH, P["w1aT"], P["w2T"], P["b2col"], P["wih_big"],
      P["whhT"], P["b_lstm"], h0.reshape(1, HID), c0.reshape(1, HID),
      P["w_headT"], P["b_head"])
    critic = out[0, 0].reshape(1, 1, 1)
    actor = out[0, 1:1 + NUM_ACTIONS].reshape(1, 1, NUM_ACTIONS)
    return critic, actor


# ----------------------------------------------------------------------------
# Pure-JAX reference (for correctness check)
# ----------------------------------------------------------------------------
def reference_forward(inputs, h0, c0, P):
    feats = []
    for s in range(4):
        x = inputs[s].reshape(1, 1, 42, 42)
        y = lax.conv_general_dilated(
            x, P["conv1_w"][s], (2, 2), ((1, 1), (1, 1)),
            dimension_numbers=("NCHW", "OIHW", "NCHW"))
        y = jnp.maximum(y + P["conv1_b"][s].reshape(1, -1, 1, 1), 0.0)
        y = lax.conv_general_dilated(
            y, P["conv2_w"][s], (2, 2), ((1, 1), (1, 1)),
            dimension_numbers=("NCHW", "OIHW", "NCHW"))
        y = jnp.maximum(y + P["conv2_b"][s].reshape(1, -1, 1, 1), 0.0)
        feats.append(y.reshape(FEAT))
    xseq = jnp.stack(feats)
    h = h0.reshape(1, HID)
    c = c0.reshape(1, HID)
    wih, whh = P["wih"], P["whh"]
    b = (P["bih"] + P["bhh"]).reshape(1, 4 * HID)
    for t in range(4):
        g = xseq[t:t + 1] @ wih.T + h @ whh.T + b
        i = jax.nn.sigmoid(g[:, 0 * HID:1 * HID])
        f = jax.nn.sigmoid(g[:, 1 * HID:2 * HID])
        gg = jnp.tanh(g[:, 2 * HID:3 * HID])
        o = jax.nn.sigmoid(g[:, 3 * HID:4 * HID])
        c = f * c + i * gg
        h = o * jnp.tanh(c)
    critic = h @ P["wc"].T + P["bc"].reshape(1, 1)
    actor = h @ P["wa"].T + P["ba"].reshape(1, NUM_ACTIONS)
    return critic.reshape(1, 1, 1), actor.reshape(1, 1, NUM_ACTIONS)


# ----------------------------------------------------------------------------
# Deterministic parameter construction (+ kernel-friendly fused views)
# ----------------------------------------------------------------------------
def make_params(key):
    ks = jax.random.split(key, 12)
    f32 = jnp.float32
    conv1_w = jax.random.normal(ks[0], (4, 32, 1, 3, 3), f32) * (1.0 / 3.0)
    conv1_b = jax.random.normal(ks[1], (4, 32), f32) * 0.01
    conv2_w = jax.random.normal(ks[2], (4, 16, 32, 3, 3), f32) * (1.0 / np.sqrt(288))
    conv2_b = jax.random.normal(ks[3], (4, 16), f32) * 0.01
    wih = jax.random.normal(ks[4], (4 * HID, FEAT), f32) * (1.0 / np.sqrt(FEAT))
    whh = jax.random.normal(ks[5], (4 * HID, HID), f32) * (1.0 / np.sqrt(HID))
    bih = jax.random.normal(ks[6], (4 * HID,), f32) * 0.01
    bhh = jax.random.normal(ks[7], (4 * HID,), f32) * 0.01
    wc = jax.random.normal(ks[8], (1, HID), f32) * (1.0 / np.sqrt(HID))
    bc = jax.random.normal(ks[9], (1,), f32) * 0.01
    wa = jax.random.normal(ks[10], (NUM_ACTIONS, HID), f32) * (1.0 / np.sqrt(HID))
    ba = jax.random.normal(ks[11], (NUM_ACTIONS,), f32) * 0.01

    P = dict(conv1_w=conv1_w, conv1_b=conv1_b, conv2_w=conv2_w, conv2_b=conv2_b,
             wih=wih, whh=whh, bih=bih, bhh=bhh, wc=wc, bc=bc, wa=wa, ba=ba)

    c1w = np.asarray(conv1_w)
    c1b = np.asarray(conv1_b)
    c2w = np.asarray(conv2_w)
    c2b = np.asarray(conv2_b)
    wih_np = np.asarray(wih)

    # conv1 weights (transposed, stream-block-diagonal) + bias column 36.
    w1aT = np.zeros((128, 40), np.float32)
    for s in range(4):
        w1aT[32 * s:32 * s + 32, 9 * s:9 * s + 9] = c1w[s].reshape(32, 9)
        w1aT[32 * s:32 * s + 32, 36] = c1b[s]

    # conv2 weights, transposed, all 9 taps stacked along K; output rows = 4*c2 + s.
    w2T = np.zeros((64, 9 * 128), np.float32)
    b2col = np.zeros((64, 1), np.float32)
    for s in range(4):
        for c2 in range(16):
            r = 4 * c2 + s
            b2col[r, 0] = c2b[s, c2]
            for ki2 in range(3):
                for kj2 in range(3):
                    t = ki2 * 3 + kj2
                    w2T[r, 128 * t + 32 * s:128 * t + 32 * s + 32] = \
                        c2w[s, c2, :, ki2, kj2]

    # LSTM input weights reordered to the y2f layout; zero rows for pos padding.
    wih_big = np.zeros((2048, 4 * HID), np.float32)
    for c2 in range(16):
        wih_big[128 * c2:128 * c2 + 121, :] = wih_np[:, 121 * c2:121 * (c2 + 1)].T

    # Fused lane-dense head: lane 0 critic, lanes 1..6 actor, rest zero.
    w_headT = np.zeros((HID, 128), np.float32)
    w_headT[:, 0] = np.asarray(wc)[0]
    w_headT[:, 1:1 + NUM_ACTIONS] = np.asarray(wa).T
    b_head = np.zeros((1, 128), np.float32)
    b_head[0, 0] = float(np.asarray(bc)[0])
    b_head[0, 1:1 + NUM_ACTIONS] = np.asarray(ba)

    mm = MATMUL_DTYPE
    P["w1aT"] = jnp.asarray(w1aT, mm)
    P["w2T"] = jnp.asarray(w2T, mm)
    P["wih_big"] = jnp.asarray(wih_big, mm)
    P["b2col"] = jnp.asarray(b2col)
    P["whhT"] = jnp.asarray(np.asarray(whh).T.copy())
    P["b_lstm"] = jnp.asarray((np.asarray(bih) + np.asarray(bhh)).reshape(1, 4 * HID))
    P["w_headT"] = jnp.asarray(w_headT)
    P["b_head"] = jnp.asarray(b_head)
    return P


if __name__ == "__main__":
    key = jax.random.PRNGKey(0)
    k_in, k_h, k_c, k_p = jax.random.split(key, 4)

    # Shapes implied by the module: 4 frames of 42x42, LSTM hidden 32.
    inputs = jax.random.normal(k_in, (4, 1, 42, 42), jnp.float32)
    h0 = jax.random.normal(k_h, (1, 1, HID), jnp.float32) * 0.1
    c0 = jax.random.normal(k_c, (1, 1, HID), jnp.float32) * 0.1
    params = make_params(k_p)

    fwd = jax.jit(actor_critic_forward)
    critic, actor = fwd(inputs, h0, c0, params)
    jax.block_until_ready((critic, actor))

    critic_ref, actor_ref = reference_forward(inputs, h0, c0, params)
    tol = 1e-3 if MATMUL_DTYPE is jnp.float32 else 5e-2   # bf16 operand rounding
    np.testing.assert_allclose(np.asarray(critic), np.asarray(critic_ref),
                               rtol=tol, atol=tol)
    np.testing.assert_allclose(np.asarray(actor), np.asarray(actor_ref),
                               rtol=tol, atol=tol)

    print("KERNEL_OK")
</pallas_src>

<mosaic_0001>
module attributes {stable_mosaic.version = 11 : i64} {
  func.func @fused_forward_kernel(%arg0: memref<40x1152xbf16, #tpu.memory_space<vmem>>, %arg1: memref<128x40xbf16, #tpu.memory_space<vmem>>, %arg2: memref<64x1152xbf16, #tpu.memory_space<vmem>>, %arg3: memref<64x1xf32, #tpu.memory_space<vmem>>, %arg4: memref<2048x128xbf16, #tpu.memory_space<vmem>>, %arg5: memref<32x128xf32, #tpu.memory_space<vmem>>, %arg6: memref<1x128xf32, #tpu.memory_space<vmem>>, %arg7: memref<1x32xf32, #tpu.memory_space<vmem>>, %arg8: memref<1x32xf32, #tpu.memory_space<vmem>>, %arg9: memref<32x128xf32, #tpu.memory_space<vmem>>, %arg10: memref<1x128xf32, #tpu.memory_space<vmem>>, %arg11: memref<1x128xf32, #tpu.memory_space<vmem>>, %arg12: memref<1152x128xf32, #tpu.memory_space<vmem>>, %arg13: memref<8x2048xf32, #tpu.memory_space<vmem>>) attributes {dimension_semantics = [], scalar_prefetch = 0 : i64, scratch_operands = 2 : i64, tpu.core_type = #tpu.core_type<tc>} {
    %c0 = arith.constant 0 : index
    %c0_0 = arith.constant 0 : index
    %0 = vector.load %arg1[%c0, %c0_0] : memref<128x40xbf16, #tpu.memory_space<vmem>>, vector<128x40xbf16>
    %c0_1 = arith.constant 0 : index
    %c0_2 = arith.constant 0 : index
    %1 = vector.load %arg0[%c0_1, %c0_2] : memref<40x1152xbf16, #tpu.memory_space<vmem>>, vector<40x1152xbf16>
    %cst = arith.constant dense<0.000000e+00> : vector<128x1152xf32>
    %2 = tpu.matmul %0, %1, %cst {dimension_numbers = #tpu.dot_dimension_numbers<[1], [0], [0], [1], [0, 0, 1, 1], [], []>} : vector<128x40xbf16>, vector<40x1152xbf16>, vector<128x1152xf32> -> vector<128x1152xf32>
    %cst_3 = arith.constant 0.000000e+00 : f32
    %3 = vector.broadcast %cst_3 : f32 to vector<128x1152xf32>
    %4 = arith.maximumf %2, %3 : vector<128x1152xf32>
    %5 = vector.extract_strided_slice %4 {offsets = [0, 0], sizes = [128, 128], strides = [1, 1]} : vector<128x1152xf32> to vector<128x128xf32>
    %c0_4 = arith.constant 0 : index
    %c0_5 = arith.constant 0 : index
    %6 = vector.load %arg12[%c0_4, %c0_5] : memref<1152x128xf32, #tpu.memory_space<vmem>>, vector<128x128xf32>
    tpu.vector_store %arg12[%c0_4, %c0_5], %5 {strides = array<i32>} : memref<1152x128xf32, #tpu.memory_space<vmem>>, vector<128x128xf32>,
    %7 = vector.extract_strided_slice %4 {offsets = [0, 128], sizes = [128, 128], strides = [1, 1]} : vector<128x1152xf32> to vector<128x128xf32>
    %c128 = arith.constant 128 : index
    %c0_6 = arith.constant 0 : index
    %8 = vector.load %arg12[%c128, %c0_6] : memref<1152x128xf32, #tpu.memory_space<vmem>>, vector<128x128xf32>
    tpu.vector_store %arg12[%c128, %c0_6], %7 {strides = array<i32>} : memref<1152x128xf32, #tpu.memory_space<vmem>>, vector<128x128xf32>,
    %9 = vector.extract_strided_slice %4 {offsets = [0, 256], sizes = [128, 128], strides = [1, 1]} : vector<128x1152xf32> to vector<128x128xf32>
    %c256 = arith.constant 256 : index
    %c0_7 = arith.constant 0 : index
    %10 = vector.load %arg12[%c256, %c0_7] : memref<1152x128xf32, #tpu.memory_space<vmem>>, vector<128x128xf32>
    tpu.vector_store %arg12[%c256, %c0_7], %9 {strides = array<i32>} : memref<1152x128xf32, #tpu.memory_space<vmem>>, vector<128x128xf32>,
    %11 = vector.extract_strided_slice %4 {offsets = [0, 384], sizes = [128, 128], strides = [1, 1]} : vector<128x1152xf32> to vector<128x128xf32>
    %c384 = arith.constant 384 : index
    %c0_8 = arith.constant 0 : index
    %12 = vector.load %arg12[%c384, %c0_8] : memref<1152x128xf32, #tpu.memory_space<vmem>>, vector<128x128xf32>
    tpu.vector_store %arg12[%c384, %c0_8], %11 {strides = array<i32>} : memref<1152x128xf32, #tpu.memory_space<vmem>>, vector<128x128xf32>,
    %13 = vector.extract_strided_slice %4 {offsets = [0, 512], sizes = [128, 128], strides = [1, 1]} : vector<128x1152xf32> to vector<128x128xf32>
    %c512 = arith.constant 512 : index
    %c0_9 = arith.constant 0 : index
    %14 = vector.load %arg12[%c512, %c0_9] : memref<1152x128xf32, #tpu.memory_space<vmem>>, vector<128x128xf32>
    tpu.vector_store %arg12[%c512, %c0_9], %13 {strides = array<i32>} : memref<1152x128xf32, #tpu.memory_space<vmem>>, vector<128x128xf32>,
    %15 = vector.extract_strided_slice %4 {offsets = [0, 640], sizes = [128, 128], strides = [1, 1]} : vector<128x1152xf32> to vector<128x128xf32>
    %c640 = arith.constant 640 : index
    %c0_10 = arith.constant 0 : index
    %16 = vector.load %arg12[%c640, %c0_10] : memref<1152x128xf32, #tpu.memory_space<vmem>>, vector<128x128xf32>
    tpu.vector_store %arg12[%c640, %c0_10], %15 {strides = array<i32>} : memref<1152x128xf32, #tpu.memory_space<vmem>>, vector<128x128xf32>,
    %17 = vector.extract_strided_slice %4 {offsets = [0, 768], sizes = [128, 128], strides = [1, 1]} : vector<128x1152xf32> to vector<128x128xf32>
    %c768 = arith.constant 768 : index
    %c0_11 = arith.constant 0 : index
    %18 = vector.load %arg12[%c768, %c0_11] : memref<1152x128xf32, #tpu.memory_space<vmem>>, vector<128x128xf32>
    tpu.vector_store %arg12[%c768, %c0_11], %17 {strides = array<i32>} : memref<1152x128xf32, #tpu.memory_space<vmem>>, vector<128x128xf32>,
    %19 = vector.extract_strided_slice %4 {offsets = [0, 896], sizes = [128, 128], strides = [1, 1]} : vector<128x1152xf32> to vector<128x128xf32>
    %c896 = arith.constant 896 : index
    %c0_12 = arith.constant 0 : index
    %20 = vector.load %arg12[%c896, %c0_12] : memref<1152x128xf32, #tpu.memory_space<vmem>>, vector<128x128xf32>
    tpu.vector_store %arg12[%c896, %c0_12], %19 {strides = array<i32>} : memref<1152x128xf32, #tpu.memory_space<vmem>>, vector<128x128xf32>,
    %21 = vector.extract_strided_slice %4 {offsets = [0, 1024], sizes = [128, 128], strides = [1, 1]} : vector<128x1152xf32> to vector<128x128xf32>
    %c1024 = arith.constant 1024 : index
    %c0_13 = arith.constant 0 : index
    %22 = vector.load %arg12[%c1024, %c0_13] : memref<1152x128xf32, #tpu.memory_space<vmem>>, vector<128x128xf32>
    tpu.vector_store %arg12[%c1024, %c0_13], %21 {strides = array<i32>} : memref<1152x128xf32, #tpu.memory_space<vmem>>, vector<128x128xf32>,
    %c0_14 = arith.constant 0 : index
    %c0_15 = arith.constant 0 : index
    %23 = vector.load %arg2[%c0_14, %c0_15] : memref<64x1152xbf16, #tpu.memory_space<vmem>>, vector<64x1152xbf16>
    %c0_16 = arith.constant 0 : index
    %c0_17 = arith.constant 0 : index
    %24 = vector.load %arg12[%c0_16, %c0_17] : memref<1152x128xf32, #tpu.memory_space<vmem>>, vector<1152x128xf32>
    %25 = arith.truncf %24 : vector<1152x128xf32> to vector<1152x128xbf16>
    %cst_18 = arith.constant dense<0.000000e+00> : vector<64x128xf32>
    %26 = tpu.matmul %23, %25, %cst_18 {dimension_numbers = #tpu.dot_dimension_numbers<[1], [0], [0], [1], [0, 0, 1, 1], [], []>} : vector<64x1152xbf16>, vector<1152x128xbf16>, vector<64x128xf32> -> vector<64x128xf32>
    %c0_19 = arith.constant 0 : index
    %c0_20 = arith.constant 0 : index
    %27 = vector.load %arg3[%c0_19, %c0_20] : memref<64x1xf32, #tpu.memory_space<vmem>>, vector<64x1xf32>
    %28 = vector.broadcast %27 : vector<64x1xf32> to vector<64x128xf32>
    %29 = arith.addf %26, %28 : vector<64x128xf32>
    %cst_21 = arith.constant 0.000000e+00 : f32
    %30 = vector.broadcast %cst_21 : f32 to vector<64x128xf32>
    %31 = arith.maximumf %29, %30 : vector<64x128xf32>
    %cst_22 = arith.constant 0.000000e+00 : f32
    %32 = vector.broadcast %cst_22 : f32 to vector<8x2048xf32>
    %c0_23 = arith.constant 0 : index
    %c0_24 = arith.constant 0 : index
    %33 = vector.load %arg13[%c0_23, %c0_24] : memref<8x2048xf32, #tpu.memory_space<vmem>>, vector<8x2048xf32>
    tpu.vector_store %arg13[%c0_23, %c0_24], %32 {strides = array<i32>} : memref<8x2048xf32, #tpu.memory_space<vmem>>, vector<8x2048xf32>,
    %34 = vector.extract_strided_slice %31 {offsets = [0, 0], sizes = [4, 128], strides = [1, 1]} : vector<64x128xf32> to vector<4x128xf32>
    %c0_25 = arith.constant 0 : index
    %c0_26 = arith.constant 0 : index
    %35 = vector.load %arg13[%c0_25, %c0_26] : memref<8x2048xf32, #tpu.memory_space<vmem>>, vector<4x128xf32>
    tpu.vector_store %arg13[%c0_25, %c0_26], %34 {strides = array<i32>} : memref<8x2048xf32, #tpu.memory_space<vmem>>, vector<4x128xf32>,
    %36 = vector.extract_strided_slice %31 {offsets = [4, 0], sizes = [4, 128], strides = [1, 1]} : vector<64x128xf32> to vector<4x128xf32>
    %c0_27 = arith.constant 0 : index
    %c128_28 = arith.constant 128 : index
    %37 = vector.load %arg13[%c0_27, %c128_28] : memref<8x2048xf32, #tpu.memory_space<vmem>>, vector<4x128xf32>
    tpu.vector_store %arg13[%c0_27, %c128_28], %36 {strides = array<i32>} : memref<8x2048xf32, #tpu.memory_space<vmem>>, vector<4x128xf32>,
    %38 = vector.extract_strided_slice %31 {offsets = [8, 0], sizes = [4, 128], strides = [1, 1]} : vector<64x128xf32> to vector<4x128xf32>
    %c0_29 = arith.constant 0 : index
    %c256_30 = arith.constant 256 : index
    %39 = vector.load %arg13[%c0_29, %c256_30] : memref<8x2048xf32, #tpu.memory_space<vmem>>, vector<4x128xf32>
    tpu.vector_store %arg13[%c0_29, %c256_30], %38 {strides = array<i32>} : memref<8x2048xf32, #tpu.memory_space<vmem>>, vector<4x128xf32>,
    %40 = vector.extract_strided_slice %31 {offsets = [12, 0], sizes = [4, 128], strides = [1, 1]} : vector<64x128xf32> to vector<4x128xf32>
    %c0_31 = arith.constant 0 : index
    %c384_32 = arith.constant 384 : index
    %41 = vector.load %arg13[%c0_31, %c384_32] : memref<8x2048xf32, #tpu.memory_space<vmem>>, vector<4x128xf32>
    tpu.vector_store %arg13[%c0_31, %c384_32], %40 {strides = array<i32>} : memref<8x2048xf32, #tpu.memory_space<vmem>>, vector<4x128xf32>,
    %42 = vector.extract_strided_slice %31 {offsets = [16, 0], sizes = [4, 128], strides = [1, 1]} : vector<64x128xf32> to vector<4x128xf32>
    %c0_33 = arith.constant 0 : index
    %c512_34 = arith.constant 512 : index
    %43 = vector.load %arg13[%c0_33, %c512_34] : memref<8x2048xf32, #tpu.memory_space<vmem>>, vector<4x128xf32>
    tpu.vector_store %arg13[%c0_33, %c512_34], %42 {strides = array<i32>} : memref<8x2048xf32, #tpu.memory_space<vmem>>, vector<4x128xf32>,
    %44 = vector.extract_strided_slice %31 {offsets = [20, 0], sizes = [4, 128], strides = [1, 1]} : vector<64x128xf32> to vector<4x128xf32>
    %c0_35 = arith.constant 0 : index
    %c640_36 = arith.constant 640 : index
    %45 = vector.load %arg13[%c0_35, %c640_36] : memref<8x2048xf32, #tpu.memory_space<vmem>>, vector<4x128xf32>
    tpu.vector_store %arg13[%c0_35, %c640_36], %44 {strides = array<i32>} : memref<8x2048xf32, #tpu.memory_space<vmem>>, vector<4x128xf32>,
    %46 = vector.extract_strided_slice %31 {offsets = [24, 0], sizes = [4, 128], strides = [1, 1]} : vector<64x128xf32> to vector<4x128xf32>
    %c0_37 = arith.constant 0 : index
    %c768_38 = arith.constant 768 : index
    %47 = vector.load %arg13[%c0_37, %c768_38] : memref<8x2048xf32, #tpu.memory_space<vmem>>, vector<4x128xf32>
    tpu.vector_store %arg13[%c0_37, %c768_38], %46 {strides = array<i32>} : memref<8x2048xf32, #tpu.memory_space<vmem>>, vector<4x128xf32>,
    %48 = vector.extract_strided_slice %31 {offsets = [28, 0], sizes = [4, 128], strides = [1, 1]} : vector<64x128xf32> to vector<4x128xf32>
    %c0_39 = arith.constant 0 : index
    %c896_40 = arith.constant 896 : index
    %49 = vector.load %arg13[%c0_39, %c896_40] : memref<8x2048xf32, #tpu.memory_space<vmem>>, vector<4x128xf32>
    tpu.vector_store %arg13[%c0_39, %c896_40], %48 {strides = array<i32>} : memref<8x2048xf32, #tpu.memory_space<vmem>>, vector<4x128xf32>,
    %50 = vector.extract_strided_slice %31 {offsets = [32, 0], sizes = [4, 128], strides = [1, 1]} : vector<64x128xf32> to vector<4x128xf32>
    %c0_41 = arith.constant 0 : index
    %c1024_42 = arith.constant 1024 : index
    %51 = vector.load %arg13[%c0_41, %c1024_42] : memref<8x2048xf32, #tpu.memory_space<vmem>>, vector<4x128xf32>
    tpu.vector_store %arg13[%c0_41, %c1024_42], %50 {strides = array<i32>} : memref<8x2048xf32, #tpu.memory_space<vmem>>, vector<4x128xf32>,
    %52 = vector.extract_strided_slice %31 {offsets = [36, 0], sizes = [4, 128], strides = [1, 1]} : vector<64x128xf32> to vector<4x128xf32>
    %c0_43 = arith.constant 0 : index
    %c1152 = arith.constant 1152 : index
    %53 = vector.load %arg13[%c0_43, %c1152] : memref<8x2048xf32, #tpu.memory_space<vmem>>, vector<4x128xf32>
    tpu.vector_store %arg13[%c0_43, %c1152], %52 {strides = array<i32>} : memref<8x2048xf32, #tpu.memory_space<vmem>>, vector<4x128xf32>,
    %54 = vector.extract_strided_slice %31 {offsets = [40, 0], sizes = [4, 128], strides = [1, 1]} : vector<64x128xf32> to vector<4x128xf32>
    %c0_44 = arith.constant 0 : index
    %c1280 = arith.constant 1280 : index
    %55 = vector.load %arg13[%c0_44, %c1280] : memref<8x2048xf32, #tpu.memory_space<vmem>>, vector<4x128xf32>
    tpu.vector_store %arg13[%c0_44, %c1280], %54 {strides = array<i32>} : memref<8x2048xf32, #tpu.memory_space<vmem>>, vector<4x128xf32>,
    %56 = vector.extract_strided_slice %31 {offsets = [44, 0], sizes = [4, 128], strides = [1, 1]} : vector<64x128xf32> to vector<4x128xf32>
    %c0_45 = arith.constant 0 : index
    %c1408 = arith.constant 1408 : index
    %57 = vector.load %arg13[%c0_45, %c1408] : memref<8x2048xf32, #tpu.memory_space<vmem>>, vector<4x128xf32>
    tpu.vector_store %arg13[%c0_45, %c1408], %56 {strides = array<i32>} : memref<8x2048xf32, #tpu.memory_space<vmem>>, vector<4x128xf32>,
    %58 = vector.extract_strided_slice %31 {offsets = [48, 0], sizes = [4, 128], strides = [1, 1]} : vector<64x128xf32> to vector<4x128xf32>
    %c0_46 = arith.constant 0 : index
    %c1536 = arith.constant 1536 : index
    %59 = vector.load %arg13[%c0_46, %c1536] : memref<8x2048xf32, #tpu.memory_space<vmem>>, vector<4x128xf32>
    tpu.vector_store %arg13[%c0_46, %c1536], %58 {strides = array<i32>} : memref<8x2048xf32, #tpu.memory_space<vmem>>, vector<4x128xf32>,
    %60 = vector.extract_strided_slice %31 {offsets = [52, 0], sizes = [4, 128], strides = [1, 1]} : vector<64x128xf32> to vector<4x128xf32>
    %c0_47 = arith.constant 0 : index
    %c1664 = arith.constant 1664 : index
    %61 = vector.load %arg13[%c0_47, %c1664] : memref<8x2048xf32, #tpu.memory_space<vmem>>, vector<4x128xf32>
    tpu.vector_store %arg13[%c0_47, %c1664], %60 {strides = array<i32>} : memref<8x2048xf32, #tpu.memory_space<vmem>>, vector<4x128xf32>,
    %62 = vector.extract_strided_slice %31 {offsets = [56, 0], sizes = [4, 128], strides = [1, 1]} : vector<64x128xf32> to vector<4x128xf32>
    %c0_48 = arith.constant 0 : index
    %c1792 = arith.constant 1792 : index
    %63 = vector.load %arg13[%c0_48, %c1792] : memref<8x2048xf32, #tpu.memory_space<vmem>>, vector<4x128xf32>
    tpu.vector_store %arg13[%c0_48, %c1792], %62 {strides = array<i32>} : memref<8x2048xf32, #tpu.memory_space<vmem>>, vector<4x128xf32>,
    %64 = vector.extract_strided_slice %31 {offsets = [60, 0], sizes = [4, 128], strides = [1, 1]} : vector<64x128xf32> to vector<4x128xf32>
    %c0_49 = arith.constant 0 : index
    %c1920 = arith.constant 1920 : index
    %65 = vector.load %arg13[%c0_49, %c1920] : memref<8x2048xf32, #tpu.memory_space<vmem>>, vector<4x128xf32>
    tpu.vector_store %arg13[%c0_49, %c1920], %64 {strides = array<i32>} : memref<8x2048xf32, #tpu.memory_space<vmem>>, vector<4x128xf32>,
    %c0_50 = arith.constant 0 : index
    %c0_51 = arith.constant 0 : index
    %66 = vector.load %arg13[%c0_50, %c0_51] : memref<8x2048xf32, #tpu.memory_space<vmem>>, vector<8x2048xf32>
    %67 = arith.truncf %66 : vector<8x2048xf32> to vector<8x2048xbf16>
    %c0_52 = arith.constant 0 : index
    %c0_53 = arith.constant 0 : index
    %68 = vector.load %arg4[%c0_52, %c0_53] : memref<2048x128xbf16, #tpu.memory_space<vmem>>, vector<2048x128xbf16>
    %cst_54 = arith.constant dense<0.000000e+00> : vector<8x128xf32>
    %69 = tpu.matmul %67, %68, %cst_54 {dimension_numbers = #tpu.dot_dimension_numbers<[1], [0], [0], [1], [0, 0, 1, 1], [], []>} : vector<8x2048xbf16>, vector<2048x128xbf16>, vector<8x128xf32> -> vector<8x128xf32>
    %c0_55 = arith.constant 0 : index
    %c0_56 = arith.constant 0 : index
    %70 = vector.load %arg7[%c0_55, %c0_56] : memref<1x32xf32, #tpu.memory_space<vmem>>, vector<1x32xf32>
    %c0_57 = arith.constant 0 : index
    %c0_58 = arith.constant 0 : index
    %71 = vector.load %arg8[%c0_57, %c0_58] : memref<1x32xf32, #tpu.memory_space<vmem>>, vector<1x32xf32>
    %c0_59 = arith.constant 0 : index
    %c0_60 = arith.constant 0 : index
    %72 = vector.load %arg5[%c0_59, %c0_60] : memref<32x128xf32, #tpu.memory_space<vmem>>, vector<32x128xf32>
    %c0_61 = arith.constant 0 : index
    %c0_62 = arith.constant 0 : index
    %73 = vector.load %arg6[%c0_61, %c0_62] : memref<1x128xf32, #tpu.memory_space<vmem>>, vector<1x128xf32>
    %74 = vector.extract_strided_slice %69 {offsets = [0, 0], sizes = [1, 128], strides = [1, 1]} : vector<8x128xf32> to vector<1x128xf32>
    %75 = arith.addf %74, %73 : vector<1x128xf32>
    %cst_63 = arith.constant dense<0.000000e+00> : vector<1x128xf32>
    %76 = tpu.matmul %70, %72, %cst_63 {dimension_numbers = #tpu.dot_dimension_numbers<[1], [0], [0], [1], [0, 0, 1, 1], [], []>} : vector<1x32xf32>, vector<32x128xf32>, vector<1x128xf32> -> vector<1x128xf32>
    %77 = arith.addf %75, %76 : vector<1x128xf32>
    %78 = vector.extract_strided_slice %77 {offsets = [0, 0], sizes = [1, 32], strides = [1, 1]} : vector<1x128xf32> to vector<1x32xf32>
    %cst_64 = arith.constant 0.000000e+00 : f32
    %79 = vector.broadcast %cst_64 : f32 to vector<1x32xf32>
    %80 = arith.subf %79, %78 : vector<1x32xf32>
    %81 = math.exp %80 : vector<1x32xf32>
    %cst_65 = arith.constant 1.000000e+00 : f32
    %82 = vector.broadcast %cst_65 : f32 to vector<1x32xf32>
    %83 = arith.addf %82, %81 : vector<1x32xf32>
    %84 = tpu.reciprocal %83 {approx = true} : vector<1x32xf32> -> vector<1x32xf32>
    %85 = vector.extract_strided_slice %77 {offsets = [0, 32], sizes = [1, 32], strides = [1, 1]} : vector<1x128xf32> to vector<1x32xf32>
    %cst_66 = arith.constant 0.000000e+00 : f32
    %86 = vector.broadcast %cst_66 : f32 to vector<1x32xf32>
    %87 = arith.subf %86, %85 : vector<1x32xf32>
    %88 = math.exp %87 : vector<1x32xf32>
    %cst_67 = arith.constant 1.000000e+00 : f32
    %89 = vector.broadcast %cst_67 : f32 to vector<1x32xf32>
    %90 = arith.addf %89, %88 : vector<1x32xf32>
    %91 = tpu.reciprocal %90 {approx = true} : vector<1x32xf32> -> vector<1x32xf32>
    %92 = vector.extract_strided_slice %77 {offsets = [0, 64], sizes = [1, 32], strides = [1, 1]} : vector<1x128xf32> to vector<1x32xf32>
    %93 = math.tanh %92 : vector<1x32xf32>
    %94 = vector.extract_strided_slice %77 {offsets = [0, 96], sizes = [1, 32], strides = [1, 1]} : vector<1x128xf32> to vector<1x32xf32>
    %cst_68 = arith.constant 0.000000e+00 : f32
    %95 = vector.broadcast %cst_68 : f32 to vector<1x32xf32>
    %96 = arith.subf %95, %94 : vector<1x32xf32>
    %97 = math.exp %96 : vector<1x32xf32>
    %cst_69 = arith.constant 1.000000e+00 : f32
    %98 = vector.broadcast %cst_69 : f32 to vector<1x32xf32>
    %99 = arith.addf %98, %97 : vector<1x32xf32>
    %100 = tpu.reciprocal %99 {approx = true} : vector<1x32xf32> -> vector<1x32xf32>
    %101 = arith.mulf %91, %71 : vector<1x32xf32>
    %102 = arith.mulf %84, %93 : vector<1x32xf32>
    %103 = arith.addf %101, %102 : vector<1x32xf32>
    %104 = math.tanh %103 : vector<1x32xf32>
    %105 = arith.mulf %100, %104 : vector<1x32xf32>
    %106 = vector.extract_strided_slice %69 {offsets = [1, 0], sizes = [1, 128], strides = [1, 1]} : vector<8x128xf32> to vector<1x128xf32>
    %107 = arith.addf %106, %73 : vector<1x128xf32>
    %cst_70 = arith.constant dense<0.000000e+00> : vector<1x128xf32>
    %108 = tpu.matmul %105, %72, %cst_70 {dimension_numbers = #tpu.dot_dimension_numbers<[1], [0], [0], [1], [0, 0, 1, 1], [], []>} : vector<1x32xf32>, vector<32x128xf32>, vector<1x128xf32> -> vector<1x128xf32>
    %109 = arith.addf %107, %108 : vector<1x128xf32>
    %110 = vector.extract_strided_slice %109 {offsets = [0, 0], sizes = [1, 32], strides = [1, 1]} : vector<1x128xf32> to vector<1x32xf32>
    %cst_71 = arith.constant 0.000000e+00 : f32
    %111 = vector.broadcast %cst_71 : f32 to vector<1x32xf32>
    %112 = arith.subf %111, %110 : vector<1x32xf32>
    %113 = math.exp %112 : vector<1x32xf32>
    %cst_72 = arith.constant 1.000000e+00 : f32
    %114 = vector.broadcast %cst_72 : f32 to vector<1x32xf32>
    %115 = arith.addf %114, %113 : vector<1x32xf32>
    %116 = tpu.reciprocal %115 {approx = true} : vector<1x32xf32> -> vector<1x32xf32>
    %117 = vector.extract_strided_slice %109 {offsets = [0, 32], sizes = [1, 32], strides = [1, 1]} : vector<1x128xf32> to vector<1x32xf32>
    %cst_73 = arith.constant 0.000000e+00 : f32
    %118 = vector.broadcast %cst_73 : f32 to vector<1x32xf32>
    %119 = arith.subf %118, %117 : vector<1x32xf32>
    %120 = math.exp %119 : vector<1x32xf32>
    %cst_74 = arith.constant 1.000000e+00 : f32
    %121 = vector.broadcast %cst_74 : f32 to vector<1x32xf32>
    %122 = arith.addf %121, %120 : vector<1x32xf32>
    %123 = tpu.reciprocal %122 {approx = true} : vector<1x32xf32> -> vector<1x32xf32>
    %124 = vector.extract_strided_slice %109 {offsets = [0, 64], sizes = [1, 32], strides = [1, 1]} : vector<1x128xf32> to vector<1x32xf32>
    %125 = math.tanh %124 : vector<1x32xf32>
    %126 = vector.extract_strided_slice %109 {offsets = [0, 96], sizes = [1, 32], strides = [1, 1]} : vector<1x128xf32> to vector<1x32xf32>
    %cst_75 = arith.constant 0.000000e+00 : f32
    %127 = vector.broadcast %cst_75 : f32 to vector<1x32xf32>
    %128 = arith.subf %127, %126 : vector<1x32xf32>
    %129 = math.exp %128 : vector<1x32xf32>
    %cst_76 = arith.constant 1.000000e+00 : f32
    %130 = vector.broadcast %cst_76 : f32 to vector<1x32xf32>
    %131 = arith.addf %130, %129 : vector<1x32xf32>
    %132 = tpu.reciprocal %131 {approx = true} : vector<1x32xf32> -> vector<1x32xf32>
    %133 = arith.mulf %123, %103 : vector<1x32xf32>
    %134 = arith.mulf %116, %125 : vector<1x32xf32>
    %135 = arith.addf %133, %134 : vector<1x32xf32>
    %136 = math.tanh %135 : vector<1x32xf32>
    %137 = arith.mulf %132, %136 : vector<1x32xf32>
    %138 = vector.extract_strided_slice %69 {offsets = [2, 0], sizes = [1, 128], strides = [1, 1]} : vector<8x128xf32> to vector<1x128xf32>
    %139 = arith.addf %138, %73 : vector<1x128xf32>
    %cst_77 = arith.constant dense<0.000000e+00> : vector<1x128xf32>
    %140 = tpu.matmul %137, %72, %cst_77 {dimension_numbers = #tpu.dot_dimension_numbers<[1], [0], [0], [1], [0, 0, 1, 1], [], []>} : vector<1x32xf32>, vector<32x128xf32>, vector<1x128xf32> -> vector<1x128xf32>
    %141 = arith.addf %139, %140 : vector<1x128xf32>
    %142 = vector.extract_strided_slice %141 {offsets = [0, 0], sizes = [1, 32], strides = [1, 1]} : vector<1x128xf32> to vector<1x32xf32>
    %cst_78 = arith.constant 0.000000e+00 : f32
    %143 = vector.broadcast %cst_78 : f32 to vector<1x32xf32>
    %144 = arith.subf %143, %142 : vector<1x32xf32>
    %145 = math.exp %144 : vector<1x32xf32>
    %cst_79 = arith.constant 1.000000e+00 : f32
    %146 = vector.broadcast %cst_79 : f32 to vector<1x32xf32>
    %147 = arith.addf %146, %145 : vector<1x32xf32>
    %148 = tpu.reciprocal %147 {approx = true} : vector<1x32xf32> -> vector<1x32xf32>
    %149 = vector.extract_strided_slice %141 {offsets = [0, 32], sizes = [1, 32], strides = [1, 1]} : vector<1x128xf32> to vector<1x32xf32>
    %cst_80 = arith.constant 0.000000e+00 : f32
    %150 = vector.broadcast %cst_80 : f32 to vector<1x32xf32>
    %151 = arith.subf %150, %149 : vector<1x32xf32>
    %152 = math.exp %151 : vector<1x32xf32>
    %cst_81 = arith.constant 1.000000e+00 : f32
    %153 = vector.broadcast %cst_81 : f32 to vector<1x32xf32>
    %154 = arith.addf %153, %152 : vector<1x32xf32>
    %155 = tpu.reciprocal %154 {approx = true} : vector<1x32xf32> -> vector<1x32xf32>
    %156 = vector.extract_strided_slice %141 {offsets = [0, 64], sizes = [1, 32], strides = [1, 1]} : vector<1x128xf32> to vector<1x32xf32>
    %157 = math.tanh %156 : vector<1x32xf32>
    %158 = vector.extract_strided_slice %141 {offsets = [0, 96], sizes = [1, 32], strides = [1, 1]} : vector<1x128xf32> to vector<1x32xf32>
    %cst_82 = arith.constant 0.000000e+00 : f32
    %159 = vector.broadcast %cst_82 : f32 to vector<1x32xf32>
    %160 = arith.subf %159, %158 : vector<1x32xf32>
    %161 = math.exp %160 : vector<1x32xf32>
    %cst_83 = arith.constant 1.000000e+00 : f32
    %162 = vector.broadcast %cst_83 : f32 to vector<1x32xf32>
    %163 = arith.addf %162, %161 : vector<1x32xf32>
    %164 = tpu.reciprocal %163 {approx = true} : vector<1x32xf32> -> vector<1x32xf32>
    %165 = arith.mulf %155, %135 : vector<1x32xf32>
    %166 = arith.mulf %148, %157 : vector<1x32xf32>
    %167 = arith.addf %165, %166 : vector<1x32xf32>
    %168 = math.tanh %167 : vector<1x32xf32>
    %169 = arith.mulf %164, %168 : vector<1x32xf32>
    %170 = vector.extract_strided_slice %69 {offsets = [3, 0], sizes = [1, 128], strides = [1, 1]} : vector<8x128xf32> to vector<1x128xf32>
    %171 = arith.addf %170, %73 : vector<1x128xf32>
    %cst_84 = arith.constant dense<0.000000e+00> : vector<1x128xf32>
    %172 = tpu.matmul %169, %72, %cst_84 {dimension_numbers = #tpu.dot_dimension_numbers<[1], [0], [0], [1], [0, 0, 1, 1], [], []>} : vector<1x32xf32>, vector<32x128xf32>, vector<1x128xf32> -> vector<1x128xf32>
    %173 = arith.addf %171, %172 : vector<1x128xf32>
    %174 = vector.extract_strided_slice %173 {offsets = [0, 0], sizes = [1, 32], strides = [1, 1]} : vector<1x128xf32> to vector<1x32xf32>
    %cst_85 = arith.constant 0.000000e+00 : f32
    %175 = vector.broadcast %cst_85 : f32 to vector<1x32xf32>
    %176 = arith.subf %175, %174 : vector<1x32xf32>
    %177 = math.exp %176 : vector<1x32xf32>
    %cst_86 = arith.constant 1.000000e+00 : f32
    %178 = vector.broadcast %cst_86 : f32 to vector<1x32xf32>
    %179 = arith.addf %178, %177 : vector<1x32xf32>
    %180 = tpu.reciprocal %179 {approx = true} : vector<1x32xf32> -> vector<1x32xf32>
    %181 = vector.extract_strided_slice %173 {offsets = [0, 32], sizes = [1, 32], strides = [1, 1]} : vector<1x128xf32> to vector<1x32xf32>
    %cst_87 = arith.constant 0.000000e+00 : f32
    %182 = vector.broadcast %cst_87 : f32 to vector<1x32xf32>
    %183 = arith.subf %182, %181 : vector<1x32xf32>
    %184 = math.exp %183 : vector<1x32xf32>
    %cst_88 = arith.constant 1.000000e+00 : f32
    %185 = vector.broadcast %cst_88 : f32 to vector<1x32xf32>
    %186 = arith.addf %185, %184 : vector<1x32xf32>
    %187 = tpu.reciprocal %186 {approx = true} : vector<1x32xf32> -> vector<1x32xf32>
    %188 = vector.extract_strided_slice %173 {offsets = [0, 64], sizes = [1, 32], strides = [1, 1]} : vector<1x128xf32> to vector<1x32xf32>
    %189 = math.tanh %188 : vector<1x32xf32>
    %190 = vector.extract_strided_slice %173 {offsets = [0, 96], sizes = [1, 32], strides = [1, 1]} : vector<1x128xf32> to vector<1x32xf32>
    %cst_89 = arith.constant 0.000000e+00 : f32
    %191 = vector.broadcast %cst_89 : f32 to vector<1x32xf32>
    %192 = arith.subf %191, %190 : vector<1x32xf32>
    %193 = math.exp %192 : vector<1x32xf32>
    %cst_90 = arith.constant 1.000000e+00 : f32
    %194 = vector.broadcast %cst_90 : f32 to vector<1x32xf32>
    %195 = arith.addf %194, %193 : vector<1x32xf32>
    %196 = tpu.reciprocal %195 {approx = true} : vector<1x32xf32> -> vector<1x32xf32>
    %197 = arith.mulf %187, %167 : vector<1x32xf32>
    %198 = arith.mulf %180, %189 : vector<1x32xf32>
    %199 = arith.addf %197, %198 : vector<1x32xf32>
    %200 = math.tanh %199 : vector<1x32xf32>
    %201 = arith.mulf %196, %200 : vector<1x32xf32>
    %c0_91 = arith.constant 0 : index
    %c0_92 = arith.constant 0 : index
    %202 = vector.load %arg9[%c0_91, %c0_92] : memref<32x128xf32, #tpu.memory_space<vmem>>, vector<32x128xf32>
    %cst_93 = arith.constant dense<0.000000e+00> : vector<1x128xf32>
    %203 = tpu.matmul %201, %202, %cst_93 {dimension_numbers = #tpu.dot_dimension_numbers<[1], [0], [0], [1], [0, 0, 1, 1], [], []>} : vector<1x32xf32>, vector<32x128xf32>, vector<1x128xf32> -> vector<1x128xf32>
    %c0_94 = arith.constant 0 : index
    %c0_95 = arith.constant 0 : index
    %204 = vector.load %arg10[%c0_94, %c0_95] : memref<1x128xf32, #tpu.memory_space<vmem>>, vector<1x128xf32>
    %205 = arith.addf %203, %204 : vector<1x128xf32>
    %c0_96 = arith.constant 0 : index
    %c0_97 = arith.constant 0 : index
    %206 = vector.load %arg11[%c0_96, %c0_97] : memref<1x128xf32, #tpu.memory_space<vmem>>, vector<1x128xf32>
    tpu.vector_store %arg11[%c0_96, %c0_97], %205 {strides = array<i32>} : memref<1x128xf32, #tpu.memory_space<vmem>>, vector<1x128xf32>,
    return
  }
}

</mosaic_0001>

<bundles_post_ra>
// kernel: actor_critic_forward.1
= control target key start
LH: loop header
LB: loop body
LE: loop exit
PB: predicated region body
PF: predicated region fallthrough
CT: control target
= control target key end

     0   :  { %vm260_vm0 = vcmask 1043456   ;;  %vm235_vm1 = vcmask 326656   ;;  %vm3102_vm2 = vcmask 261120   ;;  %s4432_s21 = smov 32   ;;  %s4433_s24 = smov 64   ;;  %s5887_s0 = inlined_call_operand.vmem [shape: bf16[40,1152], index: 0, kind: input, shape index: {}]   ;;  %s5888_s1 = inlined_call_operand.vmem [shape: bf16[128,40], index: 1, kind: input, shape index: {}]   ;;  %s5889_s2 = inlined_call_operand.vmem [shape: bf16[64,1152], index: 2, kind: input, shape index: {}]   ;;  %s5890_s3 = inlined_call_operand.vmem [shape: f32[64,1], index: 3, kind: input, shape index: {}]   ;;  %s5891_s4 = inlined_call_operand.vmem [shape: bf16[2048,128], index: 4, kind: input, shape index: {}]   ;;  %s5892_s8 = inlined_call_operand.vmem [shape: f32[1,32], index: 8, kind: input, shape index: {}]   ;;  %s5893_s5 = inlined_call_operand.vmem [shape: f32[32,128], index: 5, kind: input, shape index: {}]   ;;  %s5894_s7 = inlined_call_operand.vmem [shape: f32[1,32], index: 7, kind: input, shape index: {}]   ;;  %s5895_s6 = inlined_call_operand.vmem [shape: f32[1,128], index: 6, kind: input, shape index: {}]   ;;  %s5896_s9 = inlined_call_operand.vmem [shape: f32[32,128], index: 9, kind: input, shape index: {}]   ;;  %s5897_s10 = inlined_call_operand.vmem [shape: f32[1,128], index: 10, kind: input, shape index: {}]   ;;  %s5898_s11 = inlined_call_operand.vmem [shape: f32[1,128], index: 11, kind: output, shape index: {}]  }
   0x1   :  { %v75_v0 = vld [vmem:[%s5887_s0 + $0x90] sm:$0xff]  ;;  %v76_v1 = vld [vmem:[%s5887_s0 + $0x98] sm:$0xff]  ;;  %v3432_v6 = vld [vmem:[%s5887_s0 + $0x48] sm:$0xf] }
   0x2   :  { %v181_v2 = vunpack.c.l.b16 %v75_v0  ;;  %v182_v3 = vunpack.c.h.b16 %v75_v0  ;;  %v183_v4 = vunpack.c.l.b16 %v76_v1  ;;  %v184_v5 = vunpack.c.h.b16 %v76_v1  ;;  %v4220_v7 = vld [vmem:[%s5887_s0 + $0x68] sm:$0xf0]  ;;  %v3434_v13 = vld [vmem:[%s5887_s0 + $0x6c] sm:$0xf0]  ;;  %v4221_v15 = vld [vmem:[%s5887_s0 + $0x70] sm:$0xf0] }
   0x3   :  { %v4216_v12 = vld [vmem:[%s5887_s0 + $0x4c] sm:$0xf]  ;;  %v3440_v14 = vld [vmem:[%s5887_s0 + $0x50] sm:$0xf]  ;;  %v4217_v16 = vld [vmem:[%s5887_s0 + $0x54] sm:$0xf]  ;;  %v3433_v22 = vor.u32 %v4220_v7, %v3432_v6 }
   0x4   :  { %v208_v8 = vpack.c.b16 %v181_v2, %v181_v2  ;;  %v209_v9 = vpack.c.b16 %v182_v3, %v182_v3  ;;  %v210_v10 = vpack.c.b16 %v183_v4, %v183_v4  ;;  %v211_v11 = vpack.c.b16 %v184_v5, %v184_v5  ;;  %v3442_v17 = vld [vmem:[%s5887_s0 + $0x74] sm:$0xf0]  ;;  %v3396_v24 = vld [vmem:[%s5887_s0] sm:$0xf]  ;;  %v4211_v25 = vld [vmem:[%s5887_s0 + $0x20] sm:$0xf0] }
   0x5   :  { %v3437_v23 = vor.u32 %v4216_v12, %v3434_v13  ;;  %v3441_v26 = vor.u32 %v4221_v15, %v3440_v14  ;;  %v3445_v27 = vor.u32 %v4217_v16, %v3442_v17  ;;  %v4207_v28 = vld [vmem:[%s5887_s0 + $0x4] sm:$0xf]  ;;  %v3398_v29 = vld [vmem:[%s5887_s0 + $0x24] sm:$0xf0]  ;;  %v4212_v31 = vld [vmem:[%s5887_s0 + $0x28] sm:$0xf0]  ;;  %v3397_v34 = vor.u32 %v4211_v25, %v3396_v24 }
   0x6   :  { %v262_v18 = vsel %vm260_vm0, %v208_v8, 0  ;;  %v265_v19 = vsel %vm260_vm0, %v209_v9, 0  ;;  %v268_v20 = vsel %vm260_vm0, %v210_v10, 0  ;;  %v271_v21 = vsel %vm260_vm0, %v211_v11, 0  ;;  %v3404_v30 = vld [vmem:[%s5887_s0 + $0x8] sm:$0xf] }
   0x7   :  { %293 = vmatpush.bf16.msra.mxu0 %v262_v18  ;;  %342 = vmatpush.bf16.msra.mxu1 %v265_v19  ;;  %v4208_v32 = vld [vmem:[%s5887_s0 + $0xc] sm:$0xf]  ;;  %v3406_v33 = vld [vmem:[%s5887_s0 + $0x2c] sm:$0xf0]  ;;  %v3401_v35 = vor.u32 %v4207_v28, %v3398_v29  ;;  %v3405_v36 = vor.u32 %v4212_v31, %v3404_v30  ;;  %v4555_v38 = vld [vmem:[%s5888_s1] sm:$0xff] }
   0x8   :  { %391 = vmatpush.bf16.msra.mxu2 %v268_v20  ;;  %440 = vmatpush.bf16.msra.mxu3 %v271_v21  ;;  %v3409_v37 = vor.u32 %v4208_v32, %v3406_v33  ;;  %v77_v39 = vld [vmem:[%s5887_s0 + $0xa0] sm:$0xff]  ;;  %v4572_v43 = vld [vmem:[%s5888_s1 + $0x8] sm:$0xff]  ;;  %v4585_v44 = vld [vmem:[%s5888_s1 + $0x10] sm:$0xff] }
   0x9   :  { %v185_v40 = vunpack.c.l.b16 %v77_v39  ;;  %v3448_v45 = vld [vmem:[%s5887_s0 + $0x58] sm:$0xf]  ;;  %v4222_v46 = vld [vmem:[%s5887_s0 + $0x78] sm:$0xf0]  ;;  %v4617_v49 = vld [vmem:[%s5888_s1 + $0x20] sm:$0xff]  ;;  %v186_v52 = vunpack.c.h.b16 %v77_v39 }
   0xa   :  { %v3449_v47 = vor.u32 %v4222_v46, %v3448_v45  ;;  %v4604_v48 = vld [vmem:[%s5888_s1 + $0x18] sm:$0xff]  ;;  %5905 = vst [vmem:[#allocation5_spill] sm:$0xff] %v4617_v49  ;;  %v4630_v50 = vld [vmem:[%s5888_s1 + $0x28] sm:$0xff]  ;;  %v3412_v55 = vld [vmem:[%s5887_s0 + $0x10] sm:$0xf] }
   0xb   :  { %294 = vmatpush.bf16.msra.mxu0 %v3433_v22  ;;  %343 = vmatpush.bf16.msra.mxu1 %v3437_v23  ;;  %v212_v41 = vpack.c.b16 %v185_v40, %v185_v40  ;;  %5904 = vst [vmem:[#allocation4_spill] sm:$0xff] %v4604_v48  ;;  %v78_v51 = vld [vmem:[%s5887_s0 + $0xa8] sm:$0xff]  ;;  %v4213_v56 = vld [vmem:[%s5887_s0 + $0x30] sm:$0xf0]  ;;  %v4218_v58 = vld [vmem:[%s5887_s0 + $0x5c] sm:$0xf]  ;;  %v213_v59 = vpack.c.b16 %v186_v52, %v186_v52 }
   0xc   :  { %392 = vmatpush.bf16.msra.mxu2 %v3441_v26  ;;  %441 = vmatpush.bf16.msra.mxu3 %v3445_v27  ;;  %5906 = vst [vmem:[#allocation6_spill] sm:$0xff] %v4630_v50  ;;  %v187_v53 = vunpack.c.l.b16 %v78_v51  ;;  %v188_v54 = vunpack.c.h.b16 %v78_v51  ;;  %v3413_v57 = vor.u32 %v4213_v56, %v3412_v55  ;;  %v3450_v62 = vld [vmem:[%s5887_s0 + $0x7c] sm:$0xf0]  ;;  %v4223_v0 = vld [vmem:[%s5887_s0 + $0x80] sm:$0xf0]  ;;  %v4673_v9 = vld [vmem:[%s5888_s1 + $0x30] sm:$0xff] }
   0xd   :  { %v274_v42 = vsel %vm260_vm0, %v212_v41, 0  ;;  %v3456_v63 = vld [vmem:[%s5887_s0 + $0x60] sm:$0xf]  ;;  %v4219_v1 = vld [vmem:[%s5887_s0 + $0x64] sm:$0xf]  ;;  %v277_v3 = vsel %vm260_vm0, %v213_v59, 0  ;;  %v3453_v6 = vor.u32 %v4218_v58, %v3450_v62 }
   0xe   :  { %v214_v60 = vpack.c.b16 %v187_v53, %v187_v53  ;;  %v215_v61 = vpack.c.b16 %v188_v54, %v188_v54  ;;  %v3458_v2 = vld [vmem:[%s5887_s0 + $0x84] sm:$0xf0]  ;;  %v3457_v7 = vor.u32 %v4223_v0, %v3456_v63  ;;  %5907 = vst [vmem:[#allocation7_spill] sm:$0xff] %v4673_v9  ;;  %v4209_v10 = vld [vmem:[%s5887_s0 + $0x14] sm:$0xf]  ;;  %v4704_v19 = vld [vmem:[%s5888_s1 + $0x38] sm:$0xff] }
   0xf   :  { %295 = vmatpush.bf16.msra.mxu0 %v3397_v34  ;;  %344 = vmatpush.bf16.msra.mxu1 %v3401_v35  ;;  %v3461_v8 = vor.u32 %v4219_v1, %v3458_v2  ;;  %v3414_v11 = vld [vmem:[%s5887_s0 + $0x34] sm:$0xf0]  ;;  %v4214_v14 = vld [vmem:[%s5887_s0 + $0x38] sm:$0xf0]  ;;  %v3422_v16 = vld [vmem:[%s5887_s0 + $0x3c] sm:$0xf0] }
  0x10   :  { %393 = vmatpush.bf16.msra.mxu2 %v3405_v36  ;;  %442 = vmatpush.bf16.msra.mxu3 %v3409_v37  ;;  %v280_v4 = vsel %vm260_vm0, %v214_v60, 0  ;;  %v283_v5 = vsel %vm260_vm0, %v215_v61, 0  ;;  %v3420_v12 = vld [vmem:[%s5887_s0 + $0x18] sm:$0xf]  ;;  %v3417_v13 = vor.u32 %v4209_v10, %v3414_v11  ;;  %v4210_v15 = vld [vmem:[%s5887_s0 + $0x1c] sm:$0xf] }
  0x11   :  { %v3421_v17 = vor.u32 %v4214_v14, %v3420_v12  ;;  %v3425_v18 = vor.u32 %v4210_v15, %v3422_v16  ;;  %5908 = vst [vmem:[#allocation8_spill] sm:$0xff] %v4704_v19  ;;  %v79_v22 = vld [vmem:[%s5887_s0 + $0xb0] sm:$0xf] }
  0x12   :  { %3466 = vmatmul.msk.bf16.vlgmr.msra.gmra.mxu0 %vm235_vm1, %v4555_v38  ;;  %3474 = vmatmul.msk.bf16.vlgmr.msra.gmra.mxu1 %vm235_vm1, %v4555_v38  ;;  %v189_v23 = vunpack.c.l.b16 %v79_v22 }
  0x13   :  { %3482 = vmatmul.msk.bf16.vlgmr.msra.gmra.mxu2 %vm235_vm1, %v4555_v38  ;;  %3490 = vmatmul.msk.bf16.vlgmr.msra.gmra.mxu3 %vm235_vm1, %v4555_v38 }
  0x14   :  { %489 = vmatpush.bf16.msrb.mxu0 %v274_v42  ;;  %538 = vmatpush.bf16.msrb.mxu1 %v277_v3  ;;  %v216_v27 = vpack.c.b16 %v189_v23, %v189_v23 }
  0x15   :  { %587 = vmatpush.bf16.msrb.mxu2 %v280_v4  ;;  %636 = vmatpush.bf16.msrb.mxu3 %v283_v5 }
  0x16   :  { %v286_v33 = vsel %vm260_vm0, %v216_v27, 0 }
  0x18   :  { %490 = vmatpush.bf16.msrb.mxu0 %v3449_v47  ;;  %539 = vmatpush.bf16.msrb.mxu1 %v3453_v6 }
  0x19   :  { %588 = vmatpush.bf16.msrb.mxu2 %v3457_v7  ;;  %637 = vmatpush.bf16.msrb.mxu3 %v3461_v8 }
  0x1c   :  { %491 = vmatpush.bf16.msrb.mxu0 %v3413_v57  ;;  %540 = vmatpush.bf16.msrb.mxu1 %v3417_v13 }
  0x1d   :  { %589 = vmatpush.bf16.msrb.mxu2 %v3421_v17  ;;  %638 = vmatpush.bf16.msrb.mxu3 %v3425_v18 }
  0x20   :  { %685 = vmatpush.bf16.msra.mxu0 %v286_v33 }
  0x22   :  { %3467 = vmatmul.msk.bf16.gmra.mxu0 %vm235_vm1, %v4572_v43  ;;  %3475 = vmatmul.msk.bf16.gmra.mxu1 %vm235_vm1, %v4572_v43 }
  0x23   :  { %3483 = vmatmul.msk.bf16.gmra.mxu2 %vm235_vm1, %v4572_v43  ;;  %3491 = vmatmul.msk.bf16.gmra.mxu3 %vm235_vm1, %v4572_v43 }
  0x32   :  { %3468 = vmatmul.msk.bf16.gmra.mxu0 %vm235_vm1, %v4585_v44  ;;  %3476 = vmatmul.msk.bf16.gmra.mxu1 %vm235_vm1, %v4585_v44 }
  0x33   :  { %3484 = vmatmul.msk.bf16.gmra.mxu2 %vm235_vm1, %v4585_v44  ;;  %3492 = vmatmul.msk.bf16.gmra.mxu3 %vm235_vm1, %v4585_v44 }
  0x42   :  { %3469 = vmatmul.msk.bf16.gmra.mxu0 %vm235_vm1, %v4604_v48  ;;  %3477 = vmatmul.msk.bf16.gmra.mxu1 %vm235_vm1, %v4604_v48 }
  0x43   :  { %3485 = vmatmul.msk.bf16.gmra.mxu2 %vm235_vm1, %v4604_v48  ;;  %3493 = vmatmul.msk.bf16.gmra.mxu3 %vm235_vm1, %v4604_v48 }
  0x52   :  { %3470 = vmatmul.msk.bf16.gmra.mxu0 %vm235_vm1, %v4617_v49  ;;  %3478 = vmatmul.msk.bf16.gmra.mxu1 %vm235_vm1, %v4617_v49 }
  0x53   :  { %3486 = vmatmul.msk.bf16.gmra.mxu2 %vm235_vm1, %v4617_v49  ;;  %3494 = vmatmul.msk.bf16.gmra.mxu3 %vm235_vm1, %v4617_v49 }
  0x62   :  { %3471 = vmatmul.msk.bf16.gmra.mxu0 %vm235_vm1, %v4630_v50  ;;  %3479 = vmatmul.msk.bf16.gmra.mxu1 %vm235_vm1, %v4630_v50 }
  0x63   :  { %3487 = vmatmul.msk.bf16.gmra.mxu2 %vm235_vm1, %v4630_v50  ;;  %3495 = vmatmul.msk.bf16.gmra.mxu3 %vm235_vm1, %v4630_v50 }
  0x72   :  { %3472 = vmatmul.msk.bf16.gmra.mxu0 %vm235_vm1, %v4673_v9  ;;  %3480 = vmatmul.msk.bf16.gmra.mxu1 %vm235_vm1, %v4673_v9 }
  0x73   :  { %3488 = vmatmul.msk.bf16.gmra.mxu2 %vm235_vm1, %v4673_v9  ;;  %3496 = vmatmul.msk.bf16.gmra.mxu3 %vm235_vm1, %v4673_v9 }
  0x82   :  { %3473 = vmatmul.msk.bf16.gmra.mxu0 %vm235_vm1, %v4704_v19  ;;  %3481 = vmatmul.msk.bf16.gmra.mxu1 %vm235_vm1, %v4704_v19 }
  0x83   :  { %3489 = vmatmul.msk.bf16.gmra.mxu2 %vm235_vm1, %v4704_v19  ;;  %3497 = vmatmul.msk.bf16.gmra.mxu3 %vm235_vm1, %v4704_v19 }
  0x8f   :  { %v297_v20 = vpop.f32.mrf.mxu0  ;;  %v346_v21 = vpop.f32.mrf.mxu1 }
  0x90   :  { %v730_v24 = vmax.f32 %v346_v21, 0.0  ;;  %v729_v30 = vmax.f32 %v297_v20, 0.0 }
  0x92   :  { %3498 = vmatmul.msk.bf16.vlgmr.msrb.gmra.mxu0 %vm235_vm1, %v4555_v38  ;;  %3506 = vmatmul.msk.bf16.vlgmr.msrb.gmra.mxu1 %vm235_vm1, %v4555_v38 }
  0x93   :  { %3514 = vmatmul.msk.bf16.vlgmr.msrb.gmra.mxu2 %vm235_vm1, %v4555_v38  ;;  %3522 = vmatmul.msk.bf16.vlgmr.msrb.gmra.mxu3 %vm235_vm1, %v4555_v38 }
  0x96   :  { %v395_v25 = vpop.f32.mrf.mxu2  ;;  %v444_v26 = vpop.f32.mrf.mxu3 }
  0x97   :  { %v299_v28 = vpop.f32.mrf.mxu0  ;;  %v348_v29 = vpop.f32.mrf.mxu1  ;;  %v731_v36 = vmax.f32 %v395_v25, 0.0  ;;  %v732_v37 = vmax.f32 %v444_v26, 0.0 }
  0x98   :  { %v738_v31 = vmax.f32 %v299_v28, 0.0  ;;  %v739_v32 = vmax.f32 %v348_v29, 0.0 }
  0x9a   :  { %v4726_v34 = vpack.c.bf16 %v738_v31, %v729_v30  ;;  %v4728_v35 = vpack.c.bf16 %v739_v32, %v730_v24  ;;  %v3464_v30 = vld [vmem:[%s5887_s0 + $0x68] sm:$0xf]  ;;  %v4224_v31 = vld [vmem:[%s5887_s0 + $0x88] sm:$0xf0] }
  0x9b   :  { %v3465_v32 = vor.u32 %v4224_v31, %v3464_v30 }
  0x9d   :  { %686 = vmatpush.bf16.msra.mxu0 %v3465_v32 }
  0x9e   :  { %v397_v39 = vpop.f32.mrf.mxu2  ;;  %v446_v40 = vpop.f32.mrf.mxu3 }
  0x9f   :  { %v740_v41 = vmax.f32 %v397_v39, 0.0  ;;  %v741_v42 = vmax.f32 %v446_v40, 0.0  ;;  %v302_v45 = vpop.f32.mrf.mxu0  ;;  %v351_v46 = vpop.f32.mrf.mxu1 }
  0xa0   :  { %v748_v52 = vmax.f32 %v351_v46, 0.0  ;;  %v747_v57 = vmax.f32 %v302_v45, 0.0 }
  0xa1   :  { %v4730_v47 = vpack.c.bf16 %v740_v41, %v731_v36  ;;  %v4732_v51 = vpack.c.bf16 %v741_v42, %v732_v37 }
  0xa2   :  { %3499 = vmatmul.msk.bf16.gmra.mxu0 %vm235_vm1, %v4572_v43  ;;  %3507 = vmatmul.msk.bf16.gmra.mxu1 %vm235_vm1, %v4572_v43 }
  0xa3   :  { %5909 = vst [vmem:[#allocation9_spill] sm:$0xff] %v4732_v51  ;;  %3515 = vmatmul.msk.bf16.gmra.mxu2 %vm235_vm1, %v4572_v43  ;;  %3523 = vmatmul.msk.bf16.gmra.mxu3 %vm235_vm1, %v4572_v43 }
  0xa6   :  { %v400_v53 = vpop.f32.mrf.mxu2  ;;  %v449_v54 = vpop.f32.mrf.mxu3 }
  0xa7   :  { %v304_v55 = vpop.f32.mrf.mxu0  ;;  %v353_v56 = vpop.f32.mrf.mxu1  ;;  %v749_v62 = vmax.f32 %v400_v53, 0.0  ;;  %v750_v63 = vmax.f32 %v449_v54, 0.0 }
  0xa8   :  { %v756_v58 = vmax.f32 %v304_v55, 0.0  ;;  %v757_v59 = vmax.f32 %v353_v56, 0.0 }
  0xaa   :  { %v4742_v60 = vpack.c.bf16 %v756_v58, %v747_v57  ;;  %v4744_v61 = vpack.c.bf16 %v757_v59, %v748_v52 }
  0xae   :  { %v402_v0 = vpop.f32.mrf.mxu2  ;;  %v451_v1 = vpop.f32.mrf.mxu3 }
  0xaf   :  { %v758_v2 = vmax.f32 %v402_v0, 0.0  ;;  %v759_v3 = vmax.f32 %v451_v1, 0.0  ;;  %v307_v4 = vpop.f32.mrf.mxu0  ;;  %v356_v5 = vpop.f32.mrf.mxu1 }
  0xb0   :  { %v766_v8 = vmax.f32 %v356_v5, 0.0  ;;  %v765_v14 = vmax.f32 %v307_v4, 0.0 }
  0xb1   :  { %v4746_v6 = vpack.c.bf16 %v758_v2, %v749_v62  ;;  %v4748_v7 = vpack.c.bf16 %v759_v3, %v750_v63 }
  0xb2   :  { %3500 = vmatmul.msk.bf16.gmra.mxu0 %vm235_vm1, %v4585_v44  ;;  %3508 = vmatmul.msk.bf16.gmra.mxu1 %vm235_vm1, %v4585_v44 }
  0xb3   :  { %3516 = vmatmul.msk.bf16.gmra.mxu2 %vm235_vm1, %v4585_v44  ;;  %3524 = vmatmul.msk.bf16.gmra.mxu3 %vm235_vm1, %v4585_v44 }
  0xb6   :  { %v405_v10 = vpop.f32.mrf.mxu2  ;;  %v454_v11 = vpop.f32.mrf.mxu3 }
  0xb7   :  { %v309_v12 = vpop.f32.mrf.mxu0  ;;  %v358_v13 = vpop.f32.mrf.mxu1  ;;  %v767_v20 = vmax.f32 %v405_v10, 0.0  ;;  %v768_v21 = vmax.f32 %v454_v11, 0.0 }
  0xb8   :  { %v774_v15 = vmax.f32 %v309_v12, 0.0  ;;  %v775_v16 = vmax.f32 %v358_v13, 0.0 }
  0xba   :  { %v4758_v17 = vpack.c.bf16 %v774_v15, %v765_v14  ;;  %v4760_v18 = vpack.c.bf16 %v775_v16, %v766_v8  ;;  %v3428_v16 = vld [vmem:[%s5887_s0 + $0x20] sm:$0xf] }
  0xbe   :  { %v407_v22 = vpop.f32.mrf.mxu2  ;;  %v456_v23 = vpop.f32.mrf.mxu3 }
  0xbf   :  { %v776_v24 = vmax.f32 %v407_v22, 0.0  ;;  %v777_v25 = vmax.f32 %v456_v23, 0.0  ;;  %v312_v26 = vpop.f32.mrf.mxu0  ;;  %v361_v27 = vpop.f32.mrf.mxu1 }
  0xc0   :  { %v784_v33 = vmax.f32 %v361_v27, 0.0  ;;  %v783_v41 = vmax.f32 %v312_v26, 0.0 }
  0xc1   :  { %v4762_v28 = vpack.c.bf16 %v776_v24, %v767_v20  ;;  %v4764_v29 = vpack.c.bf16 %v777_v25, %v768_v21  ;;  %v4215_v20 = vld [vmem:[%s5887_s0 + $0x40] sm:$0xf0] }
  0xc2   :  { %3501 = vmatmul.msk.bf16.gmra.mxu0 %vm235_vm1, %v4604_v48  ;;  %3509 = vmatmul.msk.bf16.gmra.mxu1 %vm235_vm1, %v4604_v48  ;;  %v3429_v21 = vor.u32 %v4215_v20, %v3428_v16 }
  0xc3   :  { %3517 = vmatmul.msk.bf16.gmra.mxu2 %vm235_vm1, %v4604_v48  ;;  %3525 = vmatmul.msk.bf16.gmra.mxu3 %vm235_vm1, %v4604_v48 }
  0xc4   :  { %687 = vmatpush.bf16.msra.mxu0 %v3429_v21 }
  0xc6   :  { %v410_v36 = vpop.f32.mrf.mxu2  ;;  %v459_v37 = vpop.f32.mrf.mxu3 }
  0xc7   :  { %v314_v39 = vpop.f32.mrf.mxu0  ;;  %v363_v40 = vpop.f32.mrf.mxu1  ;;  %v785_v53 = vmax.f32 %v410_v36, 0.0  ;;  %v786_v54 = vmax.f32 %v459_v37, 0.0 }
  0xc8   :  { %v792_v42 = vmax.f32 %v314_v39, 0.0  ;;  %v793_v45 = vmax.f32 %v363_v40, 0.0 }
  0xca   :  { %v4780_v46 = vpack.c.bf16 %v792_v42, %v783_v41  ;;  %v4782_v52 = vpack.c.bf16 %v793_v45, %v784_v33 }
  0xce   :  { %v412_v55 = vpop.f32.mrf.mxu2  ;;  %v461_v56 = vpop.f32.mrf.mxu3 }
  0xcf   :  { %v794_v57 = vmax.f32 %v412_v55, 0.0  ;;  %v795_v58 = vmax.f32 %v461_v56, 0.0  ;;  %v4784_v59 = vpop.f32.mrf.mxu0  ;;  %v4786_v62 = vpop.f32.mrf.mxu1 }
  0xd1   :  { %v4788_v63 = vpack.c.bf16 %v794_v57, %v785_v53  ;;  %v4790_v0 = vpack.c.bf16 %v795_v58, %v786_v54 }
  0xd2   :  { %3502 = vmatmul.msk.bf16.gmra.mxu0 %vm235_vm1, %v4617_v49  ;;  %3510 = vmatmul.msk.bf16.gmra.mxu1 %vm235_vm1, %v4617_v49 }
  0xd3   :  { %3518 = vmatmul.msk.bf16.gmra.mxu2 %vm235_vm1, %v4617_v49  ;;  %3526 = vmatmul.msk.bf16.gmra.mxu3 %vm235_vm1, %v4617_v49 }
  0xd6   :  { %v4800_v1 = vpop.f32.mrf.mxu2  ;;  %v4802_v2 = vpop.f32.mrf.mxu3 }
  0xd7   :  { %v4804_v3 = vpop.f32.mrf.mxu0  ;;  %v4806_v4 = vpop.f32.mrf.mxu1 }
  0xde   :  { %v4808_v5 = vpop.f32.mrf.mxu2  ;;  %v4810_v8 = vpop.f32.mrf.mxu3 }
  0xdf   :  { %v4812_v10 = vpop.f32.mrf.mxu0  ;;  %v4814_v11 = vpop.f32.mrf.mxu1 }
  0xe0   :  { %v820_v21 = vmax.f32 %v4814_v11, 0.0  ;;  %v811_v11 = vmax.f32 %v4806_v4, 0.0 }
  0xe2   :  { %3503 = vmatmul.msk.bf16.gmra.mxu0 %vm235_vm1, %v4630_v50  ;;  %3511 = vmatmul.msk.bf16.gmra.mxu1 %vm235_vm1, %v4630_v50 }
  0xe3   :  { %3519 = vmatmul.msk.bf16.gmra.mxu2 %vm235_vm1, %v4630_v50  ;;  %3527 = vmatmul.msk.bf16.gmra.mxu3 %vm235_vm1, %v4630_v50 }
  0xe6   :  { %v4824_v12 = vpop.f32.mrf.mxu2  ;;  %v4826_v13 = vpop.f32.mrf.mxu3 }
  0xe7   :  { %v4828_v14 = vpop.f32.mrf.mxu0  ;;  %v373_v15 = vpop.f32.mrf.mxu1 }
  0xee   :  { %v4836_v22 = vpop.f32.mrf.mxu2  ;;  %v4838_v23 = vpop.f32.mrf.mxu3 }
  0xef   :  { %v327_v24 = vpop.f32.mrf.mxu0  ;;  %v376_v25 = vpop.f32.mrf.mxu1 }
  0xf0   :  { %v838_v42 = vmax.f32 %v376_v25, 0.0  ;;  %v837_v50 = vmax.f32 %v327_v24, 0.0 }
  0xf2   :  { %3504 = vmatmul.msk.bf16.gmra.mxu0 %vm235_vm1, %v4673_v9  ;;  %3512 = vmatmul.msk.bf16.gmra.mxu1 %vm235_vm1, %v4673_v9 }
  0xf3   :  { %3520 = vmatmul.msk.bf16.gmra.mxu2 %vm235_vm1, %v4673_v9  ;;  %3528 = vmatmul.msk.bf16.gmra.mxu3 %vm235_vm1, %v4673_v9  ;;  %v829_v9 = vmax.f32 %v373_v15, 0.0  ;;  %v819_v15 = vmax.f32 %v4812_v10, 0.0 }
  0xf5   :  { %v1214_v24 = vpack.c.bf16 %v829_v9, %v820_v21 }
  0xf6   :  { %v425_v26 = vpop.f32.mrf.mxu2  ;;  %v4848_v27 = vpop.f32.mrf.mxu3 }
  0xf7   :  { %v329_v30 = vpop.f32.mrf.mxu0  ;;  %v378_v31 = vpop.f32.mrf.mxu1 }
  0xf8   :  { %v847_v54 = vmax.f32 %v378_v31, 0.0  ;;  %v846_v58 = vmax.f32 %v329_v30, 0.0  ;;  %v839_v31 = vmax.f32 %v425_v26, 0.0  ;;  %v830_v26 = vmax.f32 %v4836_v22, 0.0 }
  0xfa   :  { %v1215_v49 = vpack.c.bf16 %v847_v54, %v838_v42  ;;  %v1207_v25 = vpack.c.bf16 %v846_v58, %v837_v50  ;;  %v810_v50 = vmax.f32 %v4804_v3, 0.0 }
  0xfe   :  { %v427_v32 = vpop.f32.mrf.mxu2  ;;  %v4850_v33 = vpop.f32.mrf.mxu3 }
  0xff   :  { %v332_v36 = vpop.f32.mrf.mxu0  ;;  %v381_v37 = vpop.f32.mrf.mxu1 }
 0x100   :  { %v856_v39 = vmax.f32 %v381_v37, 0.0  ;;  %v855_v55 = vmax.f32 %v332_v36, 0.0  ;;  %v848_v36 = vmax.f32 %v427_v32, 0.0 }
 0x102   :  { %3505 = vmatmul.msk.bf16.gmra.mxu0 %vm235_vm1, %v4704_v19  ;;  %3513 = vmatmul.msk.bf16.gmra.mxu1 %vm235_vm1, %v4704_v19  ;;  %v1223_v32 = vpack.c.bf16 %v848_v36, %v839_v31  ;;  %v813_v31 = vmax.f32 %v4810_v8, 0.0 }
 0x103   :  { %3521 = vmatmul.msk.bf16.gmra.mxu2 %vm235_vm1, %v4704_v19  ;;  %3529 = vmatmul.msk.bf16.gmra.mxu3 %vm235_vm1, %v4704_v19  ;;  %v828_v19 = vmax.f32 %v4828_v14, 0.0 }
 0x105   :  { %v1206_v14 = vpack.c.bf16 %v828_v19, %v819_v15  ;;  %v803_v19 = vmax.f32 %v4800_v1, 0.0 }
 0x106   :  { %v430_v40 = vpop.f32.mrf.mxu2  ;;  %v4860_v41 = vpop.f32.mrf.mxu3 }
 0x107   :  { %v334_v45 = vpop.f32.mrf.mxu0  ;;  %v383_v53 = vpop.f32.mrf.mxu1  ;;  %v857_v37 = vmax.f32 %v430_v40, 0.0  ;;  %v858_v58 = vmax.f32 %v4860_v41, 0.0 }
 0x108   :  { %v864_v56 = vmax.f32 %v334_v45, 0.0  ;;  %v865_v57 = vmax.f32 %v383_v53, 0.0 }
 0x10a   :  { %v1208_v16 = vpack.c.bf16 %v864_v56, %v855_v55  ;;  %v1216_v20 = vpack.c.bf16 %v865_v57, %v856_v39  ;;  %v802_v39 = vmax.f32 %v4786_v62, 0.0  ;;  %v801_v62 = vmax.f32 %v4784_v59, 0.0 }
 0x10c   :  { %1505 = vmatpush.bf16.msra.mxu1 %v1208_v16  ;;  %1534 = vmatpush.bf16.msra.mxu2 %v1216_v20  ;;  %v1213_v4 = vpack.c.bf16 %v811_v11, %v802_v39  ;;  %v1205_v9 = vpack.c.bf16 %v810_v50, %v801_v62 }
 0x10e   :  { %v432_v51 = vpop.f32.mrf.mxu2  ;;  %v481_v48 = vpop.f32.mrf.mxu3 }
 0x10f   :  { %v866_v45 = vmax.f32 %v432_v51, 0.0  ;;  %v493_v53 = vpop.f32.mrf.mxu0  ;;  %v4864_v30 = vpop.f32.mrf.mxu1  ;;  %v821_v51 = vmax.f32 %v4824_v12, 0.0  ;;  %v867_v16 = vmax.f32 %v481_v48, 0.0  ;;  %v849_v48 = vmax.f32 %v4850_v33, 0.0 }
 0x110   :  { %1506 = vmatpush.bf16.msra.mxu1 %v1207_v25  ;;  %1535 = vmatpush.bf16.msra.mxu2 %v1215_v49  ;;  %v733_v42 = vmax.f32 %v493_v53, 0.0  ;;  %v831_v33 = vmax.f32 %v4838_v23, 0.0 }
 0x111   :  { %v1224_v40 = vpack.c.bf16 %v866_v45, %v857_v37  ;;  %v1222_v3 = vpack.c.bf16 %v830_v26, %v821_v51  ;;  %v5920_v26 = vld [vmem:[#allocation4_spill] sm:$0xff] }
 0x112   :  { %3530 = vmatmul.msk.bf16.vlgmr.msra.gmra.mxu0 %vm235_vm1, %v4555_v38  ;;  %v812_v38 = vmax.f32 %v4808_v5, 0.0 }
 0x113   :  { %1563 = vmatpush.bf16.msra.mxu3 %v1224_v40 }
 0x114   :  { %1507 = vmatpush.bf16.msra.mxu1 %v1206_v14  ;;  %1536 = vmatpush.bf16.msra.mxu2 %v1214_v24  ;;  %v1221_v55 = vpack.c.bf16 %v812_v38, %v803_v19 }
 0x116   :  { %v4875_v49 = vpop.f32.mrf.mxu2  ;;  %v4877_v10 = vpop.f32.mrf.mxu3 }
 0x117   :  { %5910 = vst [vmem:[#allocation10_spill] sm:$0xff] %v4875_v49  ;;  %1564 = vmatpush.bf16.msra.mxu3 %v1223_v32  ;;  %v495_v12 = vpop.f32.mrf.mxu0  ;;  %v4881_v22 = vpop.f32.mrf.mxu1  ;;  %v5921_v32 = vld [vmem:[#allocation9_spill] sm:$0xff] }
 0x118   :  { %5911 = vst [vmem:[#allocation11_spill] sm:$0xff] %v4877_v10  ;;  %v742_v54 = vmax.f32 %v495_v12, 0.0  ;;  %1508 = vmatpush.bf16.msra.mxu1 %v1205_v9  ;;  %1537 = vmatpush.bf16.msra.mxu2 %v1213_v4  ;;  %v4225_v12 = vld [vmem:[%s5889_s2 + $0x4] sm:$0xf] }
 0x11a   :  { %v4883_v59 = vpack.c.bf16 %v742_v54, %v733_v42  ;;  %v3542_v42 = vld [vmem:[%s5889_s2 + $0x24] sm:$0xf0] }
 0x11b   :  { %1565 = vmatpush.bf16.msra.mxu3 %v1222_v3 }
 0x11c   :  { %5912 = vst [vmem:[#allocation12_spill] sm:$0xff] %v4883_v59  ;;  %1509 = vmatpush.bf16.msra.mxu1 %v4780_v46  ;;  %1538 = vmatpush.bf16.msra.mxu2 %v4782_v52  ;;  %v3540_v46 = vld [vmem:[%s5889_s2] sm:$0xf]  ;;  %v1232_v52 = vpack.c.bf16 %v867_v16, %v858_v58  ;;  %v4230_v58 = vld [vmem:[%s5889_s2 + $0x28] sm:$0xf0] }
 0x11e   :  { %v4887_v1 = vpop.f32.mrf.mxu2  ;;  %v4889_v5 = vpop.f32.mrf.mxu3 }
 0x11f   :  { %5913 = vst [vmem:[#allocation13_spill] sm:$0xff] %v4887_v1  ;;  %1566 = vmatpush.bf16.msra.mxu3 %v1221_v55  ;;  %v498_v56 = vpop.f32.mrf.mxu0  ;;  %v4891_v57 = vpop.f32.mrf.mxu1  ;;  %v3545_v55 = vor.u32 %v4225_v12, %v3542_v42  ;;  %v3620_v42 = vld [vmem:[%s5889_s2 + $0x98] sm:$0xf] }
 0x120   :  { %5914 = vst [vmem:[#allocation14_spill] sm:$0xff] %v4889_v5  ;;  %1510 = vmatpush.bf16.msra.mxu1 %v4758_v17  ;;  %1539 = vmatpush.bf16.msra.mxu2 %v4760_v18  ;;  %v4229_v17 = vld [vmem:[%s5889_s2 + $0x20] sm:$0xf0]  ;;  %v840_v18 = vmax.f32 %v4848_v27, 0.0  ;;  %v751_v20 = vmax.f32 %v498_v56, 0.0  ;;  %v822_v27 = vmax.f32 %v4826_v13, 0.0 }
 0x121   :  { %v3541_v41 = vor.u32 %v4229_v17, %v3540_v46  ;;  %v3548_v56 = vld [vmem:[%s5889_s2 + $0x8] sm:$0xf] }
 0x122   :  { %3531 = vmatmul.msk.bf16.gmra.mxu0 %vm235_vm1, %v4572_v43  ;;  %v1231_v37 = vpack.c.bf16 %v849_v48, %v840_v18  ;;  %v1230_v36 = vpack.c.bf16 %v831_v33, %v822_v27  ;;  %v3549_v16 = vor.u32 %v4230_v58, %v3548_v56 }
 0x123   :  { %1567 = vmatpush.bf16.msra.mxu3 %v4788_v63 }
 0x124   :  { %1511 = vmatpush.bf16.msra.mxu1 %v4742_v60  ;;  %1540 = vmatpush.bf16.msra.mxu2 %v4744_v61 }
 0x126   :  { %v4909_v43 = vpop.f32.mrf.mxu2  ;;  %v4911_v63 = vpop.f32.mrf.mxu3 }
 0x127   :  { %5915 = vst [vmem:[#allocation15_spill] sm:$0xff] %v4909_v43  ;;  %1568 = vmatpush.bf16.msra.mxu3 %v4762_v28  ;;  %v500_v60 = vpop.f32.mrf.mxu0  ;;  %v4914_v61 = vpop.f32.mrf.mxu1  ;;  %v804_v28 = vmax.f32 %v4802_v2, 0.0  ;;  %v4238_v2 = vld [vmem:[%s5889_s2 + $0x68] sm:$0xf0] }
 0x128   :  { %5916 = vst [vmem:[#allocation16_spill] sm:$0xff] %v4911_v63  ;;  %v760_v21 = vmax.f32 %v500_v60, 0.0  ;;  %1512 = vmatpush.bf16.msra.mxu1 %v4726_v34  ;;  %1541 = vmatpush.bf16.msra.mxu2 %v4728_v35  ;;  %v3648_v60 = vld [vmem:[%s5889_s2 + $0xd8] sm:$0xf] }
 0x129   :  { %v1229_v45 = vpack.c.bf16 %v813_v31, %v804_v28  ;;  %v4234_v28 = vld [vmem:[%s5889_s2 + $0x4c] sm:$0xf]  ;;  %v3578_v31 = vld [vmem:[%s5889_s2 + $0x6c] sm:$0xf0] }
 0x12a   :  { %v4920_v25 = vpack.c.bf16 %v760_v21, %v751_v20 }
 0x12b   :  { %1569 = vmatpush.bf16.msra.mxu3 %v4746_v6  ;;  %1513 = vmatmul.bf16.vlgmr.msra.gmra.mxu1 %v3541_v41  ;;  %v3576_v6 = vld [vmem:[%s5889_s2 + $0x48] sm:$0xf]  ;;  %v4256_v41 = vld [vmem:[%s5889_s2 + $0xf8] sm:$0xf0] }
 0x12c   :  { %1592 = vmatpush.bf16.msrb.mxu1 %v1232_v52  ;;  %5917 = vst [vmem:[#allocation17_spill] sm:$0xff] %v4920_v25  ;;  %v3577_v11 = vor.u32 %v4238_v2, %v3576_v6  ;;  %1542 = vmatmul.bf16.vlgmr.msra.gmra.mxu2 %v3545_v55  ;;  %v5922_v52 = vld [vmem:[#allocation5_spill] sm:$0xff]  ;;  %v4248_v55 = vld [vmem:[%s5889_s2 + $0xb8] sm:$0xf0] }
 0x12d   :  { %v3621_v56 = vor.u32 %v4248_v55, %v3620_v42 }
 0x12e   :  { %v4925_v34 = vpop.f32.mrf.mxu2  ;;  %v4927_v35 = vpop.f32.mrf.mxu3 }
 0x12f   :  { %5918 = vst [vmem:[#allocation18_spill] sm:$0xff] %v4925_v34  ;;  %1570 = vmatpush.bf16.msra.mxu3 %v4730_v47  ;;  %v503_v13 = vpop.f32.mrf.mxu0  ;;  %v4930_v23 = vpop.f32.mrf.mxu1 }
 0x130   :  { %1593 = vmatpush.bf16.msrb.mxu1 %v1231_v37  ;;  %5919 = vst [vmem:[#allocation19_spill] sm:$0xff] %v4927_v35  ;;  %v769_v15 = vmax.f32 %v503_v13, 0.0  ;;  %v3649_v37 = vor.u32 %v4256_v41, %v3648_v60  ;;  %v3584_v13 = vld [vmem:[%s5889_s2 + $0x50] sm:$0xf]  ;;  %v5924_v41 = vld [vmem:[#allocation7_spill] sm:$0xff] }
 0x132   :  { %3532 = vmatmul.msk.bf16.gmra.mxu0 %vm235_vm1, %v4585_v44  ;;  %1571 = vmatmul.bf16.vlgmr.msra.gmra.mxu3 %v3549_v16 }
 0x134   :  { %1594 = vmatpush.bf16.msrb.mxu1 %v1230_v36  ;;  %v3581_v36 = vor.u32 %v4234_v28, %v3578_v31  ;;  %v3586_v28 = vld [vmem:[%s5889_s2 + $0x74] sm:$0xf0] }
 0x136   :  { %v4940_v8 = vpop.f32.mrf.mxu2  ;;  %v4942_v47 = vpop.f32.mrf.mxu3 }
 0x137   :  { %v505_v53 = vpop.f32.mrf.mxu0  ;;  %v4944_v39 = vpop.f32.mrf.mxu1 }
 0x138   :  { %1595 = vmatpush.bf16.msrb.mxu1 %v1229_v45  ;;  %v778_v24 = vmax.f32 %v505_v53, 0.0  ;;  %v4239_v45 = vld [vmem:[%s5889_s2 + $0x70] sm:$0xf0] }
 0x139   :  { %v3585_v6 = vor.u32 %v4239_v45, %v3584_v13 }
 0x13a   :  { %v4947_v44 = vpack.c.bf16 %v778_v24, %v769_v15  ;;  %v5923_v24 = vld [vmem:[#allocation6_spill] sm:$0xff] }
 0x13b   :  { %1518 = vmatmul.bf16.gmra.mxu1 %v3577_v11 }
 0x13c   :  { %1596 = vmatpush.bf16.msrb.mxu1 %v4790_v0  ;;  %v3612_v0 = vld [vmem:[%s5889_s2 + $0x90] sm:$0xf]  ;;  %1547 = vmatmul.bf16.gmra.mxu2 %v3581_v36 }
 0x13e   :  { %v4950_v40 = vpop.f32.mrf.mxu2  ;;  %v4952_v50 = vpop.f32.mrf.mxu3 }
 0x13f   :  { %v508_v14 = vpop.f32.mrf.mxu0  ;;  %v4954_v51 = vpop.f32.mrf.mxu1 }
 0x140   :  { %1597 = vmatpush.bf16.msrb.mxu1 %v4764_v29  ;;  %v4247_v29 = vld [vmem:[%s5889_s2 + $0xb0] sm:$0xf0]  ;;  %v787_v38 = vmax.f32 %v508_v14, 0.0  ;;  %v4226_v14 = vld [vmem:[%s5889_s2 + $0xc] sm:$0xf] }
 0x142   :  { %3533 = vmatmul.msk.bf16.gmra.mxu0 %vm235_vm1, %v5920_v26  ;;  %1576 = vmatmul.bf16.gmra.mxu3 %v3585_v6  ;;  %v3550_v26 = vld [vmem:[%s5889_s2 + $0x2c] sm:$0xf0] }
 0x144   :  { %1598 = vmatpush.bf16.msrb.mxu1 %v4748_v7  ;;  %v3613_v7 = vor.u32 %v4247_v29, %v3612_v0 }
 0x146   :  { %v4966_v62 = vpop.f32.mrf.mxu2  ;;  %v4968_v4 = vpop.f32.mrf.mxu3 }
 0x147   :  { %v510_v9 = vpop.f32.mrf.mxu0  ;;  %v4970_v19 = vpop.f32.mrf.mxu1 }
 0x148   :  { %1599 = vmatpush.bf16.msrb.mxu1 %v5921_v32  ;;  %v796_v3 = vmax.f32 %v510_v9, 0.0 }
 0x14a   :  { %v4978_v54 = vpack.c.bf16 %v796_v3, %v787_v38  ;;  %v4243_v38 = vld [vmem:[%s5889_s2 + $0x94] sm:$0xf]  ;;  %v3614_v3 = vld [vmem:[%s5889_s2 + $0xb4] sm:$0xf0] }
 0x14b   :  { %1523 = vmatmul.bf16.gmra.mxu1 %v3613_v7  ;;  %v3553_v7 = vor.u32 %v4226_v14, %v3550_v26  ;;  %v3617_v12 = vor.u32 %v4243_v38, %v3614_v3  ;;  %v3650_v14 = vld [vmem:[%s5889_s2 + $0xfc] sm:$0xf0]  ;;  %v4257_v38 = vld [vmem:[%s5889_s2 + $0x100] sm:$0xf0] }
 0x14d   :  { %1552 = vmatmul.bf16.gmra.mxu2 %v3617_v12 }
 0x14e   :  { %v4986_v46 = vpop.f32.mrf.mxu2  ;;  %v4988_v17 = vpop.f32.mrf.mxu3 }
 0x14f   :  { %v4990_v18 = vpop.f32.mrf.mxu0  ;;  %v4992_v48 = vpop.f32.mrf.mxu1 }
 0x152   :  { %3534 = vmatmul.msk.bf16.gmra.mxu0 %vm235_vm1, %v5922_v52  ;;  %1581 = vmatmul.bf16.gmra.mxu3 %v3621_v56 }
 0x156   :  { %v5002_v20 = vpop.f32.mrf.mxu2  ;;  %v5004_v21 = vpop.f32.mrf.mxu3 }
 0x157   :  { %v5006_v27 = vpop.f32.mrf.mxu0  ;;  %v5008_v33 = vpop.f32.mrf.mxu1 }
 0x15b   :  { %1528 = vmatmul.bf16.gmra.mxu1 %v3649_v37  ;;  %v4235_v37 = vld [vmem:[%s5889_s2 + $0x54] sm:$0xf] }
 0x15c   :  { %v3589_v6 = vor.u32 %v4235_v37, %v3586_v28  ;;  %v4244_v37 = vld [vmem:[%s5889_s2 + $0x9c] sm:$0xf]  ;;  %v3622_v28 = vld [vmem:[%s5889_s2 + $0xbc] sm:$0xf0] }
 0x15e   :  { %v5022_v2 = vpop.f32.mrf.mxu2  ;;  %v5024_v53 = vpop.f32.mrf.mxu3 }
 0x15f   :  { %v5026_v11 = vpop.f32.mrf.mxu0  ;;  %v5028_v15 = vpop.f32.mrf.mxu1 }
 0x160   :  { %v824_v35 = vmax.f32 %v5028_v15, 0.0 }
 0x162   :  { %3535 = vmatmul.msk.bf16.gmra.mxu0 %vm235_vm1, %v5923_v24  ;;  %v4252_v24 = vld [vmem:[%s5889_s2 + $0xdc] sm:$0xf] }
 0x163   :  { %v3653_v26 = vor.u32 %v4252_v24, %v3650_v14 }
 0x165   :  { %1557 = vmatmul.bf16.gmra.mxu2 %v3653_v26 }
 0x166   :  { %v5038_v0 = vpop.f32.mrf.mxu2  ;;  %v5040_v29 = vpop.f32.mrf.mxu3 }
 0x167   :  { %v5042_v32 = vpop.f32.mrf.mxu0  ;;  %v5044_v9 = vpop.f32.mrf.mxu1 }
 0x168   :  { %v833_v34 = vmax.f32 %v5044_v9, 0.0 }
 0x16b   :  { %1600 = vmatmul.bf16.vlgmr.msrb.gmra.mxu1 %v3553_v7  ;;  %v3656_v7 = vld [vmem:[%s5889_s2 + $0xe0] sm:$0xf] }
 0x16c   :  { %v3657_v3 = vor.u32 %v4257_v38, %v3656_v7 }
 0x16e   :  { %v5058_v58 = vpop.f32.mrf.mxu2  ;;  %v5060_v16 = vpop.f32.mrf.mxu3  ;;  %1586 = vmatmul.bf16.gmra.mxu3 %v3657_v3  ;;  %v3625_v3 = vor.u32 %v4244_v37, %v3622_v28  ;;  %v832_v37 = vmax.f32 %v5042_v32, 0.0  ;;  %v1246_v32 = vpack.c.bf16 %v833_v34, %v824_v35 }
 0x16f   :  { %v523_v52 = vpop.f32.mrf.mxu0  ;;  %v572_v60 = vpop.f32.mrf.mxu1  ;;  %v834_v34 = vmax.f32 %v5058_v58, 0.0  ;;  %v835_v35 = vmax.f32 %v5060_v16, 0.0  ;;  %v808_v58 = vmax.f32 %v5004_v21, 0.0  ;;  %v770_v21 = vmax.f32 %v4930_v23, 0.0 }
 0x170   :  { %v842_v26 = vmax.f32 %v572_v60, 0.0  ;;  %v841_v63 = vmax.f32 %v523_v52, 0.0 }
 0x172   :  { %3536 = vmatmul.msk.bf16.gmra.mxu0 %vm235_vm1, %v5924_v41  ;;  %v5925_v41 = vld [vmem:[#allocation8_spill] sm:$0xff] }
 0x176   :  { %v5070_v31 = vpop.f32.mrf.mxu2  ;;  %v5072_v36 = vpop.f32.mrf.mxu3 }
 0x177   :  { %v525_v13 = vpop.f32.mrf.mxu0  ;;  %v574_v45 = vpop.f32.mrf.mxu1 }
 0x178   :  { %v851_v5 = vmax.f32 %v574_v45, 0.0  ;;  %v843_v45 = vmax.f32 %v5070_v31, 0.0 }
 0x17b   :  { %1605 = vmatmul.bf16.gmra.mxu1 %v3589_v6 }
 0x17e   :  { %v623_v12 = vpop.f32.mrf.mxu2  ;;  %v672_v42 = vpop.f32.mrf.mxu3 }
 0x17f   :  { %v528_v55 = vpop.f32.mrf.mxu0  ;;  %v577_v56 = vpop.f32.mrf.mxu1  ;;  %v853_v28 = vmax.f32 %v672_v42, 0.0 }
 0x180   :  { %v860_v6 = vmax.f32 %v577_v56, 0.0  ;;  %v859_v1 = vmax.f32 %v528_v55, 0.0  ;;  %v1247_v56 = vpack.c.bf16 %v851_v5, %v842_v26  ;;  %v844_v55 = vmax.f32 %v5072_v36, 0.0  ;;  %v4253_v26 = vld [vmem:[%s5889_s2 + $0xe4] sm:$0xf] }
 0x181   :  { %v815_v5 = vmax.f32 %v5008_v33, 0.0  ;;  %v825_v36 = vmax.f32 %v5038_v0, 0.0  ;;  %v805_v0 = vmax.f32 %v4990_v18, 0.0  ;;  %v817_v18 = vmax.f32 %v5024_v53, 0.0  ;;  %v1274_v53 = vld [vmem:[%s5890_s3 + $0x8] sm:$0xff] }
 0x182   :  { %3537 = vmatmul.msk.bf16.gmra.mxu0 %vm235_vm1, %v5925_v41  ;;  %v850_v41 = vmax.f32 %v525_v13, 0.0 }
 0x183   :  { %v1261_v23 = vpack.c.bf16 %v817_v18, %v808_v58  ;;  %v3566_v18 = vld [vmem:[%s5889_s2 + $0x3c] sm:$0xf0] }
 0x184   :  { %v1239_v13 = vpack.c.bf16 %v850_v41, %v841_v63  ;;  %v814_v63 = vmax.f32 %v5006_v27, 0.0  ;;  %v788_v27 = vmax.f32 %v4954_v51, 0.0  ;;  %v3658_v51 = vld [vmem:[%s5889_s2 + $0x104] sm:$0xf0] }
 0x186   :  { %v626_v24 = vpop.f32.mrf.mxu2  ;;  %v675_v14 = vpop.f32.mrf.mxu3  ;;  %v1237_v16 = vpack.c.bf16 %v814_v63, %v805_v0  ;;  %v3558_v63 = vld [vmem:[%s5889_s2 + $0x34] sm:$0xf0]  ;;  %v5935_v0 = vld [vmem:[#allocation14_spill] sm:$0xff] }
 0x187   :  { %v530_v7 = vpop.f32.mrf.mxu0  ;;  %v579_v38 = vpop.f32.mrf.mxu1  ;;  %v861_v60 = vmax.f32 %v626_v24, 0.0  ;;  %v862_v43 = vmax.f32 %v675_v14, 0.0  ;;  %v4430_v24 = vmov 0   ;;  %v807_v14 = vmax.f32 %v5002_v20, 0.0 }
 0x188   :  { %v868_v59 = vmax.f32 %v530_v7, 0.0  ;;  %v869_v10 = vmax.f32 %v579_v38, 0.0  ;;  %4393 = vset.pattern.permute.xlu0 %v4430_v24  ;;  %4394 = vset.pattern.permute.xlu1 %v4430_v24  ;;  %v1254_v7 = vpack.c.bf16 %v834_v34, %v825_v36 }
 0x189   :  { %4395 = vset.pattern.permute.xlu2 %v4430_v24 }
 0x18a   :  { %v1240_v49 = vpack.c.bf16 %v868_v59, %v859_v1  ;;  %v1248_v25 = vpack.c.bf16 %v869_v10, %v860_v6  ;;  %v852_v1 = vmax.f32 %v623_v12, 0.0  ;;  %v826_v12 = vmax.f32 %v5040_v29, 0.0 }
 0x18b   :  { %1610 = vmatmul.bf16.gmra.mxu1 %v3625_v3  ;;  %v779_v3 = vmax.f32 %v4944_v39, 0.0 }
 0x18c   :  { %1621 = vmatpush.bf16.msrb.mxu2 %v1240_v49  ;;  %1650 = vmatpush.bf16.msrb.mxu3 %v1248_v25  ;;  %v806_v49 = vmax.f32 %v4992_v48, 0.0  ;;  %v823_v25 = vmax.f32 %v5026_v11, 0.0  ;;  %v1273_v48 = vld [vmem:[%s5890_s3] sm:$0xff]  ;;  %v1255_v33 = vpack.c.bf16 %v852_v1, %v843_v45  ;;  %v797_v11 = vmax.f32 %v4970_v19, 0.0 }
 0x18d   :  { %1283 = vperm.xlu0 %4393, %v1273_v48   ;;  %v816_v19 = vmax.f32 %v5022_v2, 0.0  ;;  %v1262_v38 = vpack.c.bf16 %v835_v35, %v826_v12  ;;  %v790_v2 = vmax.f32 %v4968_v4, 0.0  ;;  %v799_v45 = vmax.f32 %v4988_v17, 0.0  ;;  %v5932_v48 = vld [vmem:[#allocation11_spill] sm:$0xff]  ;;  %v5933_v35 = vld [vmem:[#allocation12_spill] sm:$0xff] }
 0x18e   :  { %v628_v59 = vpop.f32.mrf.mxu2  ;;  %v677_v10 = vpop.f32.mrf.mxu3  ;;  %v1238_v42 = vpack.c.bf16 %v832_v37, %v823_v25  ;;  %v1245_v29 = vpack.c.bf16 %v815_v5, %v806_v49  ;;  %v1244_v41 = vpack.c.bf16 %v797_v11, %v788_v27  ;;  %v798_v37 = vmax.f32 %v4986_v46, 0.0  ;;  %v5928_v5 = vld [vmem:[#allocation18_spill] sm:$0xff]  ;;  %v5929_v25 = vld [vmem:[#allocation19_spill] sm:$0xff]  ;;  %v5934_v27 = vld [vmem:[#allocation13_spill] sm:$0xff] }
 0x18f   :  { %v870_v15 = vmax.f32 %v628_v59, 0.0  ;;  %v871_v6 = vmax.f32 %v677_v10, 0.0  ;;  %v5099_v9 = vpop.f32.mrf.mxu0  ;;  %v1243_v39 = vpack.c.bf16 %v779_v3, %v770_v21  ;;  %v761_v4 = vmax.f32 %v4914_v61, 0.0 }
 0x190   :  { %1622 = vmatpush.bf16.msrb.mxu2 %v1239_v13  ;;  %1651 = vmatpush.bf16.msrb.mxu3 %v1247_v56  ;;  %v3661_v56 = vor.u32 %v4253_v26, %v3658_v51  ;;  %v771_v13 = vmax.f32 %v4940_v8, 0.0  ;;  %v772_v46 = vmax.f32 %v4942_v47, 0.0  ;;  %v780_v17 = vmax.f32 %v4950_v40, 0.0  ;;  %v1275_v47 = vld [vmem:[%s5890_s3 + $0x10] sm:$0xff]  ;;  %v1276_v26 = vld [vmem:[%s5890_s3 + $0x18] sm:$0xff] }
 0x191   :  { %v1256_v52 = vpack.c.bf16 %v870_v15, %v861_v60  ;;  %v1264_v31 = vpack.c.bf16 %v871_v6, %v862_v43  ;;  %v1263_v43 = vpack.c.bf16 %v853_v28, %v844_v55  ;;  %v789_v60 = vmax.f32 %v4966_v62, 0.0  ;;  %v5926_v28 = vld [vmem:[#allocation15_spill] sm:$0xff]  ;;  %v5927_v6 = vld [vmem:[#allocation16_spill] sm:$0xff]  ;;  %1293 = vperm.xlu1 %4394, %v1275_v47  }
 0x192   :  { %v1253_v55 = vpack.c.bf16 %v816_v19, %v807_v14  ;;  %v752_v62 = vmax.f32 %v4891_v57, 0.0  ;;  %v781_v59 = vmax.f32 %v4952_v50, 0.0  ;;  %v1260_v1 = vpack.c.bf16 %v799_v45, %v790_v2  ;;  %v4232_v51 = vld [vmem:[%s5889_s2 + $0x38] sm:$0xf0] }
 0x193   :  { %1679 = vmatpush.bf16.msrb.mxu0 %v1256_v52  ;;  %1708 = vmatpush.bf16.msra.mxu1 %v1264_v31  ;;  %v1252_v10 = vpack.c.bf16 %v798_v37, %v789_v60  ;;  %v734_v57 = vmax.f32 %v4864_v30, 0.0  ;;  %v743_v61 = vmax.f32 %v4881_v22, 0.0  ;;  %v1251_v40 = vpack.c.bf16 %v780_v17, %v771_v13  ;;  %v5930_v30 = vld [vmem:[#allocation17_spill] sm:$0xff]  ;;  %v3556_v22 = vld [vmem:[%s5889_s2 + $0x10] sm:$0xf] }
 0x194   :  { %1623 = vmatpush.bf16.msrb.mxu2 %v1238_v42  ;;  %1652 = vmatpush.bf16.msrb.mxu3 %v1246_v32  ;;  %v1242_v8 = vpack.c.bf16 %v761_v4, %v752_v62  ;;  %v1259_v50 = vpack.c.bf16 %v781_v59, %v772_v46  ;;  %v753_v15 = vmax.f32 %v5926_v28, 0.0  ;;  %v754_v49 = vmax.f32 %v5927_v6, 0.0  ;;  %v4231_v52 = vld [vmem:[%s5889_s2 + $0x30] sm:$0xf0]  ;;  %v4228_v19 = vld [vmem:[%s5889_s2 + $0x1c] sm:$0xf] }
 0x195   :  { %1288 = vperm.xlu0 %4393, %v1274_v53   ;;  %v763_v32 = vmax.f32 %v5929_v25, 0.0  ;;  %v4227_v31 = vld [vmem:[%s5889_s2 + $0x14] sm:$0xf]  ;;  %v1241_v36 = vpack.c.bf16 %v743_v61, %v734_v57  ;;  %v736_v34 = vmax.f32 %v5932_v48, 0.0  ;;  %v744_v11 = vmax.f32 %v5934_v27, 0.0  ;;  %v1280_v28 = vld [vmem:[%s5890_s3 + $0x38] sm:$0xff] }
 0x196   :  { %v5931_v42 = vld [vmem:[#allocation10_spill] sm:$0xff]  ;;  %v3569_v3 = vor.u32 %v4228_v19, %v3566_v18  ;;  %v4240_v60 = vld [vmem:[%s5889_s2 + $0x78] sm:$0xf0]  ;;  %v3594_v53 = vld [vmem:[%s5889_s2 + $0x7c] sm:$0xf0] }
 0x197   :  { %1680 = vmatpush.bf16.msrb.mxu0 %v1255_v33  ;;  %1709 = vmatpush.bf16.msra.mxu1 %v1263_v43  ;;  %v5125_v20 = vpop.f32.mrf.mxu0  ;;  %v735_v24 = vmax.f32 %v5931_v42, 0.0  ;;  %v3557_v33 = vor.u32 %v4231_v52, %v3556_v22  ;;  %v3561_v43 = vor.u32 %v4227_v31, %v3558_v63  ;;  %v1258_v58 = vpack.c.bf16 %v763_v32, %v754_v49  ;;  %v4236_v2 = vld [vmem:[%s5889_s2 + $0x5c] sm:$0xf]  ;;  %v4237_v62 = vld [vmem:[%s5889_s2 + $0x64] sm:$0xf] }
 0x198   :  { %1624 = vmatpush.bf16.msrb.mxu2 %v1237_v16  ;;  %1653 = vmatpush.bf16.msrb.mxu3 %v1245_v29  ;;  %v745_v29 = vmax.f32 %v5935_v0, 0.0  ;;  %v3564_v16 = vld [vmem:[%s5889_s2 + $0x18] sm:$0xf]  ;;  %v3602_v4 = vld [vmem:[%s5889_s2 + $0x84] sm:$0xf0] }
 0x199   :  { %1298 = vperm.xlu1 %4394, %v1276_v26   ;;  %v3565_v21 = vor.u32 %v4232_v51, %v3564_v16  ;;  %v3605_v46 = vor.u32 %v4237_v62, %v3602_v4  ;;  %v3628_v59 = vld [vmem:[%s5889_s2 + $0xa0] sm:$0xf]  ;;  %v3630_v57 = vld [vmem:[%s5889_s2 + $0xc4] sm:$0xf0]  ;;  %v4250_v6 = vld [vmem:[%s5889_s2 + $0xc8] sm:$0xf0] }
 0x19a   :  { %v4246_v49 = vld [vmem:[%s5889_s2 + $0xac] sm:$0xf]  ;;  %v3664_v22 = vld [vmem:[%s5889_s2 + $0xe8] sm:$0xf]  ;;  %v3666_v63 = vld [vmem:[%s5889_s2 + $0x10c] sm:$0xf0] }
 0x19b   :  { %1681 = vmatpush.bf16.msrb.mxu0 %v1254_v7  ;;  %1710 = vmatpush.bf16.msra.mxu1 %v1262_v38  ;;  %v1249_v7 = vpack.c.bf16 %v744_v11, %v735_v24  ;;  %v1257_v38 = vpack.c.bf16 %v745_v29, %v736_v34  ;;  %v4258_v52 = vld [vmem:[%s5889_s2 + $0x108] sm:$0xf0]  ;;  %v3672_v48 = vld [vmem:[%s5889_s2 + $0xf0] sm:$0xf]  ;;  %v4259_v34 = vld [vmem:[%s5889_s2 + $0x110] sm:$0xf0] }
 0x19c   :  { %1625 = vmatpush.bf16.msrb.mxu2 %v4978_v54  ;;  %1654 = vmatpush.bf16.msrb.mxu3 %v1244_v41  ;;  %v4254_v31 = vld [vmem:[%s5889_s2 + $0xec] sm:$0xf]  ;;  %v3665_v42 = vor.u32 %v4258_v52, %v3664_v22  ;;  %v3644_v22 = vld [vmem:[%s5889_s2 + $0xb0] sm:$0xf]  ;;  %v4251_v52 = vld [vmem:[%s5889_s2 + $0xd0] sm:$0xf0] }
 0x19d   :  { %1615 = vmatmul.bf16.gmra.mxu1 %v3661_v56  ;;  %v3592_v56 = vld [vmem:[%s5889_s2 + $0x58] sm:$0xf]  ;;  %v3669_v24 = vor.u32 %v4254_v31, %v3666_v63  ;;  %v3645_v31 = vor.u32 %v4251_v52, %v3644_v22  ;;  %v4285_v22 = vld [vmem:[%s5891_s4 + $0xc0] sm:$0xff] }
 0x19e   :  { %v3593_v45 = vor.u32 %v4240_v60, %v3592_v56  ;;  %v4324_v52 = vld [vmem:[%s5891_s4 + $0x1f8] sm:$0xff] }
 0x19f   :  { %1682 = vmatpush.bf16.msrb.mxu0 %v1253_v55  ;;  %1711 = vmatpush.bf16.msra.mxu1 %v1261_v23  ;;  %v5143_v54 = vpop.f32.mrf.mxu0  ;;  %v3597_v55 = vor.u32 %v4236_v2, %v3594_v53  ;;  %v3600_v23 = vld [vmem:[%s5889_s2 + $0x60] sm:$0xf] }
 0x1a0   :  { %1626 = vmatpush.bf16.msrb.mxu2 %v4947_v44  ;;  %1655 = vmatpush.bf16.msrb.mxu3 %v1243_v39  ;;  %v762_v44 = vmax.f32 %v5928_v5, 0.0  ;;  %v4241_v39 = vld [vmem:[%s5889_s2 + $0x80] sm:$0xf0]  ;;  %v3638_v5 = vld [vmem:[%s5889_s2 + $0xcc] sm:$0xf0] }
 0x1a1   :  { %v3601_v13 = vor.u32 %v4241_v39, %v3600_v23  ;;  %1318 = vperm.xlu1 %4394, %v1280_v28   ;;  %v3641_v25 = vor.u32 %v4246_v49, %v3638_v5 }
 0x1a2   :  { %v1250_v14 = vpack.c.bf16 %v762_v44, %v753_v15  ;;  %v1279_v15 = vld [vmem:[%s5890_s3 + $0x30] sm:$0xff] }
 0x1a3   :  { %1683 = vmatpush.bf16.msrb.mxu0 %v1252_v10  ;;  %1712 = vmatpush.bf16.msra.mxu1 %v1260_v1  ;;  %v4249_v10 = vld [vmem:[%s5889_s2 + $0xc0] sm:$0xf0] }
 0x1a4   :  { %1627 = vmatpush.bf16.msrb.mxu2 %v5930_v30  ;;  %1656 = vmatpush.bf16.msrb.mxu3 %v1242_v8  ;;  %v4245_v1 = vld [vmem:[%s5889_s2 + $0xa4] sm:$0xf]  ;;  %v3629_v8 = vor.u32 %v4249_v10, %v3628_v59  ;;  %v1278_v30 = vld [vmem:[%s5890_s3 + $0x28] sm:$0xff] }
 0x1a5   :  { %v3633_v47 = vor.u32 %v4245_v1, %v3630_v57  ;;  %1313 = vperm.xlu0 %4393, %v1279_v15   ;;  %v3608_v15 = vld [vmem:[%s5889_s2 + $0x68] sm:$0xf] }
 0x1a7   :  { %1684 = vmatpush.bf16.msrb.mxu0 %v1251_v40  ;;  %1713 = vmatpush.bf16.msra.mxu1 %v1259_v50  ;;  %v5168_v12 = vpop.f32.mrf.mxu0  ;;  %v3636_v40 = vld [vmem:[%s5889_s2 + $0xa8] sm:$0xf]  ;;  %v1277_v50 = vld [vmem:[%s5890_s3 + $0x20] sm:$0xff] }
 0x1a8   :  { %1628 = vmatpush.bf16.msrb.mxu2 %v5933_v35  ;;  %1657 = vmatpush.bf16.msrb.mxu3 %v1241_v36  ;;  %v3637_v44 = vor.u32 %v4250_v6, %v3636_v40  ;;  %v4255_v35 = vld [vmem:[%s5889_s2 + $0xf4] sm:$0xf]  ;;  %v764_v57 = vmax.f32 %v5168_v12, 0.0  ;;  %v737_v40 = vmax.f32 %v5099_v9, 0.0  ;;  %v4233_v12 = vld [vmem:[%s5889_s2 + $0x40] sm:$0xf0] }
 0x1a9   :  { %1303 = vperm.xlu2 %4395, %v1277_v50   ;;  %v4242_v6 = vld [vmem:[%s5889_s2 + $0x88] sm:$0xf0] }
 0x1aa   :  { %v3609_v49 = vor.u32 %v4242_v6, %v3608_v15 }
 0x1ab   :  { %1685 = vmatpush.bf16.msrb.mxu0 %v1250_v14  ;;  %1714 = vmatpush.bf16.msra.mxu1 %v1258_v58  ;;  %v5282_v58 = vpop.f32.mrf.mxu1 }
 0x1ac   :  { %1629 = vmatmul.bf16.vlgmr.msrb.gmra.mxu2 %v3557_v33  ;;  %1658 = vmatmul.bf16.vlgmr.msrb.gmra.mxu3 %v3561_v43  ;;  %v3674_v33 = vld [vmem:[%s5889_s2 + $0x114] sm:$0xf0]  ;;  %v3673_v43 = vor.u32 %v4259_v34, %v3672_v48 }
 0x1ad   :  { %v3677_v27 = vor.u32 %v4255_v35, %v3674_v33  ;;  %v4284_v48 = vld [vmem:[%s5891_s4 + $0xb8] sm:$0xff]  ;;  %v4267_v35 = vld [vmem:[%s5891_s4 + $0x30] sm:$0xff] }
 0x1ae   :  { %v4292_v34 = vld [vmem:[%s5891_s4 + $0xf8] sm:$0xff]  ;;  %v4283_v33 = vld [vmem:[%s5891_s4 + $0xb0] sm:$0xff] }
 0x1af   :  { %1686 = vmatpush.bf16.msrb.mxu0 %v1249_v7  ;;  %1715 = vmatpush.bf16.msra.mxu1 %v1257_v38  ;;  %v5190_v41 = vpop.f32.mrf.mxu0  ;;  %v5288_v53 = vpop.f32.mrf.mxu2 }
 0x1b0   :  { %v773_v1 = vmax.f32 %v5190_v41, 0.0  ;;  %v3572_v41 = vld [vmem:[%s5889_s2 + $0x20] sm:$0xf] }
 0x1b1   :  { %1308 = vperm.xlu2 %4395, %v1278_v30   ;;  %v3573_v28 = vor.u32 %v4233_v12, %v3572_v41  ;;  %v4261_v41 = vld [vmem:[%s5891_s4] sm:$0xff]  ;;  %v4294_v12 = vld [vmem:[%s5891_s4 + $0x108] sm:$0xff] }
 0x1b2   :  { %1687 = vmatmul.bf16.vlgmr.msrb.gmra.mxu0 %v3565_v21  ;;  %1716 = vmatmul.bf16.vlgmr.msra.gmra.mxu1 %v3569_v3 }
 0x1b3   :  { %v5284_v26 = vpop.f32.mrf.mxu1  ;;  %2912 = vmatpush.bf16.msra.mxu0 %v4284_v48  ;;  %2925 = vmatpush.bf16.msrb.mxu1 %v4292_v34  ;;  %v4315_v48 = vld [vmem:[%s5891_s4 + $0x1b0] sm:$0xff]  ;;  %v4274_v34 = vld [vmem:[%s5891_s4 + $0x68] sm:$0xff] }
 0x1b5   :  { %v5330_v30 = vpop.f32.mrf.mxu3 }
 0x1b7   :  { %v5204_v37 = vpop.f32.mrf.mxu0  ;;  %v5295_v10 = vpop.f32.mrf.mxu2  ;;  %2913 = vmatpush.bf16.msra.mxu0 %v4283_v33 }
 0x1bb   :  { %v5286_v60 = vpop.f32.mrf.mxu1 }
 0x1bc   :  { %1634 = vmatmul.bf16.gmra.mxu2 %v3593_v45  ;;  %1663 = vmatmul.bf16.gmra.mxu3 %v3597_v55 }
 0x1bf   :  { %v5218_v17 = vpop.f32.mrf.mxu0  ;;  %v5304_v50 = vpop.f32.mrf.mxu2 }
 0x1c0   :  { %v791_v4 = vmax.f32 %v5218_v17, 0.0 }
 0x1c2   :  { %1692 = vmatmul.bf16.gmra.mxu0 %v3601_v13  ;;  %1721 = vmatmul.bf16.gmra.mxu1 %v3605_v46  ;;  %v782_v13 = vmax.f32 %v5204_v37, 0.0 }
 0x1c3   :  { %v5293_v59 = vpop.f32.mrf.mxu1 }
 0x1c7   :  { %v5232_v61 = vpop.f32.mrf.mxu0  ;;  %v5314_v9 = vpop.f32.mrf.mxu2 }
 0x1c8   :  { %v800_v39 = vmax.f32 %v5232_v61, 0.0  ;;  %v746_v61 = vmax.f32 %v5125_v20, 0.0 }
 0x1ca   :  { %v1268_v46 = vpack.c.bf16 %v800_v39, %v791_v4  ;;  %v4288_v39 = vld [vmem:[%s5891_s4 + $0xd8] sm:$0xff] }
 0x1cb   :  { %v5302_v37 = vpop.f32.mrf.mxu1 }
 0x1cc   :  { %1639 = vmatmul.bf16.gmra.mxu2 %v3629_v8  ;;  %1668 = vmatmul.bf16.gmra.mxu3 %v3633_v47  ;;  %v1267_v8 = vpack.c.bf16 %v782_v13, %v773_v1  ;;  %v755_v47 = vmax.f32 %v5143_v54, 0.0  ;;  %v1265_v54 = vpack.c.bf16 %v746_v61, %v737_v40  ;;  %v4263_v13 = vld [vmem:[%s5891_s4 + $0x10] sm:$0xff]  ;;  %v4286_v40 = vld [vmem:[%s5891_s4 + $0xc8] sm:$0xff] }
 0x1cd   :  { %v4279_v1 = vld [vmem:[%s5891_s4 + $0x90] sm:$0xff] }
 0x1ce   :  { %v1266_v17 = vpack.c.bf16 %v764_v57, %v755_v47  ;;  %v4287_v57 = vld [vmem:[%s5891_s4 + $0xd0] sm:$0xff]  ;;  %v4262_v47 = vld [vmem:[%s5891_s4 + $0x8] sm:$0xff] }
 0x1cf   :  { %v709_v32 = vpop.f32.mrf.mxu0  ;;  %v4295_v61 = vld [vmem:[%s5891_s4 + $0x110] sm:$0xff] }
 0x1d0   :  { %v809_v23 = vmax.f32 %v709_v32, 0.0 }
 0x1d2   :  { %1697 = vmatmul.bf16.gmra.mxu0 %v3637_v44  ;;  %1726 = vmatmul.bf16.gmra.mxu1 %v3641_v25  ;;  %v5324_v44 = vpop.f32.mrf.mxu2 }
 0x1d3   :  { %v5312_v20 = vpop.f32.mrf.mxu1 }
 0x1d7   :  { %v711_v36 = vpop.f32.mrf.mxu0 }
 0x1d8   :  { %v818_v45 = vmax.f32 %v711_v36, 0.0 }
 0x1da   :  { %v1269_v62 = vpack.c.bf16 %v818_v45, %v809_v23  ;;  %v5328_v32 = vpop.f32.mrf.mxu2  ;;  %v4264_v45 = vld [vmem:[%s5891_s4 + $0x18] sm:$0xff] }
 0x1db   :  { %v5322_v5 = vpop.f32.mrf.mxu1  ;;  %v4280_v23 = vld [vmem:[%s5891_s4 + $0x98] sm:$0xff] }
 0x1dc   :  { %1644 = vmatmul.bf16.gmra.mxu2 %v3665_v42  ;;  %1673 = vmatmul.bf16.gmra.mxu3 %v3669_v24  ;;  %v5342_v42 = vpop.f32.mrf.mxu3  ;;  %v4268_v24 = vld [vmem:[%s5891_s4 + $0x38] sm:$0xff] }
 0x1dd   :  { %2886 = vmatpush.bf16.msra.mxu3 %v4268_v24  ;;  %v4275_v24 = vld [vmem:[%s5891_s4 + $0x70] sm:$0xff] }
 0x1df   :  { %v714_v11 = vpop.f32.mrf.mxu0 }
 0x1e0   :  { %v827_v2 = vmax.f32 %v714_v11, 0.0  ;;  %v4299_v11 = vld [vmem:[%s5891_s4 + $0x130] sm:$0xff] }
 0x1e1   :  { %2887 = vmatpush.bf16.msra.mxu3 %v4267_v35 }
 0x1e2   :  { %1702 = vmatmul.bf16.gmra.mxu0 %v3673_v43  ;;  %1731 = vmatmul.bf16.gmra.mxu1 %v3677_v27  ;;  %v4291_v43 = vld [vmem:[%s5891_s4 + $0xf0] sm:$0xff]  ;;  %v4300_v27 = vld [vmem:[%s5891_s4 + $0x138] sm:$0xff] }
 0x1e3   :  { %v5326_v25 = vpop.f32.mrf.mxu1  ;;  %2926 = vmatpush.bf16.msrb.mxu1 %v4291_v43  ;;  %v4273_v43 = vld [vmem:[%s5891_s4 + $0x60] sm:$0xff] }
 0x1e7   :  { %v716_v0 = vpop.f32.mrf.mxu0 }
 0x1e8   :  { %v836_v3 = vmax.f32 %v716_v0, 0.0  ;;  %v5340_v36 = vpop.f32.mrf.mxu2  ;;  %v3680_v0 = vld [vmem:[%s5889_s2 + $0xf8] sm:$0xf] }
 0x1ea   :  { %v1270_v55 = vpack.c.bf16 %v836_v3, %v827_v2  ;;  %v4298_v3 = vld [vmem:[%s5891_s4 + $0x128] sm:$0xff]  ;;  %v4289_v2 = vld [vmem:[%s5891_s4 + $0xe0] sm:$0xff] }
 0x1eb   :  { %v5338_v63 = vpop.f32.mrf.mxu1 }
 0x1ef   :  { %v719_v29 = vpop.f32.mrf.mxu0 }
 0x1f0   :  { %v845_v21 = vmax.f32 %v719_v29, 0.0  ;;  %v4260_v29 = vld [vmem:[%s5889_s2 + $0x118] sm:$0xf0] }
 0x1f7   :  { %v721_v14 = vpop.f32.mrf.mxu0 }
 0x1f8   :  { %v854_v7 = vmax.f32 %v721_v14, 0.0  ;;  %v4266_v14 = vld [vmem:[%s5891_s4 + $0x28] sm:$0xff] }
 0x1f9   :  { %2888 = vmatpush.bf16.msra.mxu3 %v4266_v14 }
 0x1fa   :  { %v1271_v56 = vpack.c.bf16 %v854_v7, %v845_v21  ;;  %v3681_v7 = vor.u32 %v4260_v29, %v3680_v0  ;;  %v4265_v21 = vld [vmem:[%s5891_s4 + $0x20] sm:$0xff] }
 0x1fd   :  { %2889 = vmatpush.bf16.msra.mxu3 %v4265_v21 }
 0x1ff   :  { %v724_v16 = vpop.f32.mrf.mxu0  ;;  %v1284_v21 = vpop.permute.xlu0 %1283 }
 0x200   :  { %v863_v19 = vmax.f32 %v724_v16, 0.0  ;;  %v4282_v16 = vld [vmem:[%s5891_s4 + $0xa8] sm:$0xff] }
 0x201   :  { %2914 = vmatpush.bf16.msra.mxu0 %v4282_v16  ;;  %2890 = vmatpush.bf16.msra.mxu3 %v4264_v45  ;;  %v4332_v45 = vld [vmem:[%s5891_s4 + $0x238] sm:$0xff] }
 0x205   :  { %2891 = vmatpush.bf16.msra.mxu3 %v4263_v13 }
 0x207   :  { %v726_v51 = vpop.f32.mrf.mxu0 }
 0x208   :  { %v872_v18 = vmax.f32 %v726_v51, 0.0  ;;  %v4290_v51 = vld [vmem:[%s5891_s4 + $0xe8] sm:$0xff] }
 0x209   :  { %2927 = vmatpush.bf16.msrb.mxu1 %v4290_v51  ;;  %2892 = vmatpush.bf16.msra.mxu3 %v4262_v47  ;;  %v4331_v47 = vld [vmem:[%s5891_s4 + $0x230] sm:$0xff] }
 0x20a   :  { %v1272_v38 = vpack.c.bf16 %v872_v18, %v863_v19  ;;  %v5383_v19 = vpop.f32.mrf.mxu1  ;;  %v5385_v18 = vpop.f32.mrf.mxu2 }
 0x20c   :  { %1737 = vmatpush.bf16.msra.mxu2 %v1272_v38  ;;  %v5387_v38 = vpop.f32.mrf.mxu3 }
 0x20d   :  { %2928 = vmatpush.bf16.msrb.mxu1 %v4289_v2  ;;  %2893 = vmatpush.bf16.msra.mxu3 %v4261_v41  ;;  %v4314_v2 = vld [vmem:[%s5891_s4 + $0x1a8] sm:$0xff]  ;;  %v4312_v41 = vld [vmem:[%s5891_s4 + $0x198] sm:$0xff] }
 0x210   :  { %1738 = vmatpush.bf16.msra.mxu2 %v1271_v56  ;;  %v4281_v56 = vld [vmem:[%s5891_s4 + $0xa0] sm:$0xff] }
 0x211   :  { %2915 = vmatpush.bf16.msra.mxu0 %v4281_v56  ;;  %2929 = vmatpush.bf16.msrb.mxu1 %v4288_v39  ;;  %v4293_v56 = vld [vmem:[%s5891_s4 + $0x100] sm:$0xff] }
 0x214   :  { %1739 = vmatpush.bf16.msra.mxu2 %v1270_v55  ;;  %v4297_v55 = vld [vmem:[%s5891_s4 + $0x120] sm:$0xff] }
 0x215   :  { %2916 = vmatpush.bf16.msra.mxu0 %v4280_v23  ;;  %2930 = vmatpush.bf16.msrb.mxu1 %v4287_v57  ;;  %v4322_v23 = vld [vmem:[%s5891_s4 + $0x1e8] sm:$0xff] }
 0x218   :  { %1740 = vmatpush.bf16.msra.mxu2 %v1269_v62  ;;  %v5413_v62 = vpop.f32.mrf.mxu1 }
 0x219   :  { %2917 = vmatpush.bf16.msra.mxu0 %v4279_v1  ;;  %2931 = vmatpush.bf16.msrb.mxu1 %v4286_v40  ;;  %v4313_v1 = vld [vmem:[%s5891_s4 + $0x1a0] sm:$0xff]  ;;  %v4270_v40 = vld [vmem:[%s5891_s4 + $0x48] sm:$0xff] }
 0x21c   :  { %1741 = vmatpush.bf16.msra.mxu2 %v1268_v46  ;;  %v4296_v46 = vld [vmem:[%s5891_s4 + $0x118] sm:$0xff] }
 0x21d   :  { %2932 = vmatpush.bf16.msrb.mxu1 %v4285_v22 }
 0x220   :  { %1742 = vmatpush.bf16.msra.mxu2 %v1267_v8  ;;  %v5429_v8 = vpop.f32.mrf.mxu3  ;;  %v5455_v15 = vpop.f32.mrf.mxu1 }
 0x221   :  { %2977 = vmatpush.bf16.msra.mxu1 %v4324_v52  ;;  %v4269_v52 = vld [vmem:[%s5891_s4 + $0x40] sm:$0xff] }
 0x224   :  { %1743 = vmatpush.bf16.msra.mxu2 %v1266_v17  ;;  %v4278_v17 = vld [vmem:[%s5891_s4 + $0x88] sm:$0xff] }
 0x225   :  { %2918 = vmatpush.bf16.msra.mxu0 %v4278_v17  ;;  %v4321_v17 = vld [vmem:[%s5891_s4 + $0x1e0] sm:$0xff] }
 0x228   :  { %1744 = vmatpush.bf16.msra.mxu2 %v1265_v54  ;;  %v4276_v54 = vld [vmem:[%s5891_s4 + $0x78] sm:$0xff]  ;;  %v5479_v35 = vpop.f32.mrf.mxu1 }
 0x229   :  { %2899 = vmatpush.bf16.msrb.mxu3 %v4276_v54  ;;  %v4330_v54 = vld [vmem:[%s5891_s4 + $0x228] sm:$0xff] }
 0x22b   :  { %1745 = vmatmul.bf16.vlgmr.msra.gmra.mxu2 %v3573_v28  ;;  %v4277_v28 = vld [vmem:[%s5891_s4 + $0x80] sm:$0xff] }
 0x22c   :  { %2938 = vmatpush.bf16.msrb.mxu2 %v4300_v27  ;;  %2919 = vmatpush.bf16.msra.mxu0 %v4277_v28 }
 0x22d   :  { %2900 = vmatpush.bf16.msrb.mxu3 %v4275_v24 }
 0x22f   :  { %v5415_v4 = vpop.f32.mrf.mxu2 }
 0x230   :  { %2939 = vmatpush.bf16.msrb.mxu2 %v4299_v11  ;;  %v5488_v11 = vpop.f32.mrf.mxu1 }
 0x231   :  { %2901 = vmatpush.bf16.msrb.mxu3 %v4274_v34  ;;  %v4329_v34 = vld [vmem:[%s5891_s4 + $0x220] sm:$0xff] }
 0x234   :  { %2940 = vmatpush.bf16.msrb.mxu2 %v4298_v3  ;;  %v4272_v3 = vld [vmem:[%s5891_s4 + $0x58] sm:$0xff] }
 0x235   :  { %2902 = vmatpush.bf16.msrb.mxu3 %v4273_v43  ;;  %v4319_v43 = vld [vmem:[%s5891_s4 + $0x1d0] sm:$0xff] }
 0x237   :  { %v5457_v6 = vpop.f32.mrf.mxu2 }
 0x238   :  { %2941 = vmatpush.bf16.msrb.mxu2 %v4297_v55  ;;  %v5494_v14 = vpop.f32.mrf.mxu1  ;;  %v1515_v55 = vadd.f32 %v5282_v58, %v1284_v21  ;;  %v4271_v58 = vld [vmem:[%s5891_s4 + $0x50] sm:$0xff] }
 0x239   :  { %2903 = vmatpush.bf16.msrb.mxu3 %v4272_v3 }
 0x23b   :  { %1750 = vmatmul.bf16.gmra.mxu2 %v3609_v49  ;;  %v4316_v49 = vld [vmem:[%s5891_s4 + $0x1b8] sm:$0xff] }
 0x23c   :  { %2942 = vmatpush.bf16.msrb.mxu2 %v4296_v46  ;;  %2964 = vmatpush.bf16.msrb.mxu0 %v4316_v49  ;;  %v4431_v46 = vmov 0.0   ;;  %v4320_v49 = vld [vmem:[%s5891_s4 + $0x1d8] sm:$0xff] }
 0x23d   :  { %1774 = vst [vmem:[#allocation3 + $0x30] sm:$0xff] %v4431_v46  ;;  %2904 = vmatpush.bf16.msrb.mxu3 %v4271_v58  ;;  %v4309_v58 = vld [vmem:[%s5891_s4 + $0x180] sm:$0xff] }
 0x23e   :  { %1775 = vst [vmem:[#allocation3] sm:$0xff] %v4431_v46 }
 0x23f   :  { %v5481_v33 = vpop.f32.mrf.mxu2  ;;  %1776 = vst [vmem:[#allocation3 + $0x58] sm:$0xff] %v4431_v46 }
 0x240   :  { %2943 = vmatpush.bf16.msrb.mxu2 %v4295_v61  ;;  %2965 = vmatpush.bf16.msrb.mxu0 %v4315_v48  ;;  %v5519_v39 = vpop.f32.mrf.mxu1  ;;  %v1544_v61 = vadd.f32 %v5288_v53, %v1515_v55  ;;  %1777 = vst [vmem:[#allocation3 + $0x18] sm:$0xff] %v4431_v46  ;;  %v1289_v53 = vpop.permute.xlu0 %1288 }
 0x241   :  { %1778 = vst [vmem:[#allocation3 + $0x50] sm:$0xff] %v4431_v46  ;;  %2905 = vmatpush.bf16.msrb.mxu3 %v4270_v40  ;;  %v1517_v22 = vadd.f32 %v5284_v26, %v1289_v53 }
 0x242   :  { %1779 = vst [vmem:[#allocation3 + $0x68] sm:$0xff] %v4431_v46  ;;  %v1573_v28 = vadd.f32 %v5330_v30, %v1544_v61  ;;  %v4311_v30 = vld [vmem:[%s5891_s4 + $0x190] sm:$0xff] }
 0x243   :  { %1780 = vst [vmem:[#allocation3 + $0x8] sm:$0xff] %v4431_v46  ;;  %v1546_v3 = vadd.f32 %v5295_v10, %v1517_v22  ;;  %v4318_v10 = vld [vmem:[%s5891_s4 + $0x1c8] sm:$0xff] }
 0x244   :  { %2944 = vmatpush.bf16.msrb.mxu2 %v4294_v12  ;;  %2966 = vmatpush.bf16.msrb.mxu0 %v4314_v2  ;;  %v1688_v12 = vpop.f32.mrf.mxu0  ;;  %1781 = vst [vmem:[#allocation3 + $0x48] sm:$0xff] %v4431_v46  ;;  %v1602_v26 = vadd.f32 %v5338_v63, %v1573_v28  ;;  %v4328_v63 = vld [vmem:[%s5891_s4 + $0x218] sm:$0xff] }
 0x245   :  { %1782 = vst [vmem:[#allocation3 + $0x40] sm:$0xff] %v4431_v46  ;;  %2906 = vmatpush.bf16.msrb.mxu3 %v4269_v52 }
 0x246   :  { %1783 = vst [vmem:[#allocation3 + $0x20] sm:$0xff] %v4431_v46  ;;  %v1631_v2 = vadd.f32 %v5415_v4, %v1602_v26  ;;  %v4327_v4 = vld [vmem:[%s5891_s4 + $0x210] sm:$0xff] }
 0x247   :  { %v5490_v0 = vpop.f32.mrf.mxu2  ;;  %1784 = vst [vmem:[#allocation3 + $0x10] sm:$0xff] %v4431_v46 }
 0x248   :  { %2945 = vmatpush.bf16.msrb.mxu2 %v4293_v56  ;;  %2967 = vmatpush.bf16.msrb.mxu0 %v4313_v1  ;;  %v1717_v24 = vpop.f32.mrf.mxu1  ;;  %1785 = vst [vmem:[#allocation3 + $0x38] sm:$0xff] %v4431_v46  ;;  %v4310_v56 = vld [vmem:[%s5891_s4 + $0x188] sm:$0xff]  ;;  %v4317_v1 = vld [vmem:[%s5891_s4 + $0x1c0] sm:$0xff] }
 0x249   :  { %1786 = vst [vmem:[#allocation3 + $0x60] sm:$0xff] %v4431_v46 }
 0x24a   :  { %1787 = vst [vmem:[#allocation3 + $0x70] sm:$0xff] %v4431_v46 }
 0x24b   :  { %1755 = vmatmul.bf16.gmra.mxu2 %v3645_v31  ;;  %v5468_v31 = vpop.f32.mrf.mxu3  ;;  %1788 = vst [vmem:[#allocation3 + $0x78] sm:$0xff] %v4431_v46 }
 0x24c   :  { %2990 = vmatpush.bf16.msra.mxu2 %v4332_v45  ;;  %2968 = vmatpush.bf16.msrb.mxu0 %v4312_v41  ;;  %1789 = vst [vmem:[#allocation3 + $0x28] sm:$0xff] %v4431_v46  ;;  %v1690_v55 = vpop.f32.mrf.mxu0 }
 0x24f   :  { %v5496_v16 = vpop.f32.mrf.mxu2 }
 0x250   :  { %2991 = vmatpush.bf16.msra.mxu2 %v4331_v47  ;;  %2969 = vmatpush.bf16.msrb.mxu0 %v4311_v30  ;;  %v1719_v47 = vpop.f32.mrf.mxu1  ;;  %v1304_v30 = vpop.permute.xlu2 %1303 }
 0x253   :  { %v5486_v27 = vpop.f32.mrf.mxu3 }
 0x254   :  { %2992 = vmatpush.bf16.msra.mxu2 %v4330_v54  ;;  %2970 = vmatpush.bf16.msrb.mxu0 %v4310_v56  ;;  %v1693_v28 = vpop.f32.mrf.mxu0 }
 0x257   :  { %v5521_v13 = vpop.f32.mrf.mxu2 }
 0x258   :  { %2993 = vmatpush.bf16.msra.mxu2 %v4329_v34  ;;  %2971 = vmatpush.bf16.msrb.mxu0 %v4309_v58  ;;  %v1722_v26 = vpop.f32.mrf.mxu1 }
 0x25b   :  { %1760 = vmatmul.bf16.gmra.mxu2 %v3681_v7  ;;  %v5492_v29 = vpop.f32.mrf.mxu3  ;;  %v4323_v7 = vld [vmem:[%s5891_s4 + $0x1f0] sm:$0xff] }
 0x25c   :  { %2978 = vmatpush.bf16.msra.mxu1 %v4323_v7  ;;  %v1294_v7 = vpop.permute.xlu1 %1293  ;;  %2994 = vmatpush.bf16.msra.mxu2 %v4328_v63 }
 0x25d   :  { %v1520_v45 = vadd.f32 %v5286_v60, %v1294_v7 }
 0x25f   :  { %v5556_v48 = vpop.f32.mrf.mxu2  ;;  %v1549_v46 = vadd.f32 %v5304_v50, %v1520_v45 }
 0x260   :  { %2979 = vmatpush.bf16.msra.mxu1 %v4322_v23  ;;  %v1575_v23 = vadd.f32 %v5342_v42, %v1546_v3  ;;  %2995 = vmatpush.bf16.msra.mxu2 %v4327_v4 }
 0x261   :  { %v1578_v53 = vadd.f32 %v5387_v38, %v1549_v46 }
 0x262   :  { %v1604_v42 = vadd.f32 %v5383_v19, %v1575_v23  ;;  %v4325_v19 = vld [vmem:[%s5891_s4 + $0x200] sm:$0xff] }
 0x263   :  { %v5498_v51 = vpop.f32.mrf.mxu3  ;;  %v1607_v52 = vadd.f32 %v5413_v62, %v1578_v53 }
 0x264   :  { %2980 = vmatpush.bf16.msra.mxu1 %v4321_v17  ;;  %v1299_v17 = vpop.permute.xlu1 %1298  ;;  %v1633_v50 = vadd.f32 %v5457_v6, %v1604_v42 }
 0x265   :  { %v1522_v54 = vadd.f32 %v5293_v59, %v1299_v17  ;;  %v1525_v59 = vadd.f32 %v5302_v37, %v1304_v30 }
 0x267   :  { %v5588_v61 = vpop.f32.mrf.mxu2  ;;  %v1554_v63 = vadd.f32 %v5324_v44, %v1525_v59 }
 0x268   :  { %2981 = vmatpush.bf16.msra.mxu1 %v4320_v49 }
 0x269   :  { %v1583_v23 = vadd.f32 %v5468_v31, %v1554_v63 }
 0x26b   :  { %v1659_v57 = vpop.f32.mrf.mxu3  ;;  %v1612_v17 = vadd.f32 %v5479_v35, %v1583_v23  ;;  %v4354_v23 = vld [vmem:[%s5891_s4 + $0x2e8] sm:$0xff] }
 0x26c   :  { %2982 = vmatpush.bf16.msra.mxu1 %v4319_v43  ;;  %v1660_v60 = vadd.f32 %v1659_v57, %v1631_v2  ;;  %v4326_v57 = vld [vmem:[%s5891_s4 + $0x208] sm:$0xff]  ;;  %v1636_v43 = vadd.f32 %v5481_v33, %v1607_v52  ;;  %v1695_v2 = vpop.f32.mrf.mxu0 }
 0x26d   :  { %2996 = vmatpush.bf16.msra.mxu2 %v4326_v57 }
 0x26e   :  { %v1689_v41 = vadd.f32 %v1688_v12, %v1660_v60  ;;  %v1551_v12 = vadd.f32 %v5314_v9, %v1522_v54  ;;  %v4308_v60 = vld [vmem:[%s5891_s4 + $0x178] sm:$0xff]  ;;  %v1641_v54 = vadd.f32 %v5496_v16, %v1612_v17 }
 0x270   :  { %2983 = vmatpush.bf16.msra.mxu1 %v4318_v10  ;;  %v1718_v49 = vadd.f32 %v1717_v24, %v1689_v41  ;;  %v1580_v56 = vadd.f32 %v5429_v8, %v1551_v12  ;;  %v1724_v8 = vpop.f32.mrf.mxu1 }
 0x271   :  { %2997 = vmatpush.bf16.msra.mxu2 %v4325_v19  ;;  %v4306_v19 = vld [vmem:[%s5891_s4 + $0x168] sm:$0xff] }
 0x272   :  { %v1609_v45 = vadd.f32 %v5455_v15, %v1580_v56  ;;  %v4355_v56 = vld [vmem:[%s5891_s4 + $0x2f0] sm:$0xff] }
 0x273   :  { %v1661_v21 = vpop.f32.mrf.mxu3 }
 0x274   :  { %2984 = vmatpush.bf16.msra.mxu1 %v4317_v1  ;;  %v1662_v22 = vadd.f32 %v1661_v21, %v1633_v50  ;;  %v1638_v37 = vadd.f32 %v5490_v0, %v1609_v45  ;;  %v1314_v0 = vpop.permute.xlu0 %1313  ;;  %v1698_v41 = vpop.f32.mrf.mxu0 }
 0x275   :  { %v1530_v50 = vadd.f32 %v5322_v5, %v1314_v0 }
 0x276   :  { %v1691_v38 = vadd.f32 %v1690_v55, %v1662_v22  ;;  %v1309_v55 = vpop.permute.xlu2 %1308 }
 0x277   :  { %v1527_v44 = vadd.f32 %v5312_v20, %v1309_v55  ;;  %v1559_v30 = vadd.f32 %v5340_v36, %v1530_v50  ;;  %v4347_v36 = vld [vmem:[%s5891_s4 + $0x2b0] sm:$0xff] }
 0x278   :  { %v1720_v21 = vadd.f32 %v1719_v47, %v1691_v38  ;;  %v1727_v5 = vpop.f32.mrf.mxu1 }
 0x279   :  { %v1556_v57 = vadd.f32 %v5328_v32, %v1527_v44  ;;  %v1588_v63 = vadd.f32 %v5492_v29, %v1559_v30  ;;  %v4364_v29 = vld [vmem:[%s5891_s4 + $0x338] sm:$0xff]  ;;  %v4303_v44 = vld [vmem:[%s5891_s4 + $0x150] sm:$0xff] }
 0x27a   :  { %v4340_v30 = vld [vmem:[%s5891_s4 + $0x278] sm:$0xff] }
 0x27b   :  { %v1664_v40 = vpop.f32.mrf.mxu3  ;;  %v1585_v32 = vadd.f32 %v5486_v27, %v1556_v57  ;;  %v4344_v57 = vld [vmem:[%s5891_s4 + $0x298] sm:$0xff] }
 0x27c   :  { %v1665_v62 = vadd.f32 %v1664_v40, %v1636_v43  ;;  %v4307_v40 = vld [vmem:[%s5891_s4 + $0x170] sm:$0xff]  ;;  %v4305_v43 = vld [vmem:[%s5891_s4 + $0x160] sm:$0xff] }
 0x27d   :  { %v1614_v59 = vadd.f32 %v5488_v11, %v1585_v32  ;;  %v4304_v11 = vld [vmem:[%s5891_s4 + $0x158] sm:$0xff]  ;;  %v4301_v32 = vld [vmem:[%s5891_s4 + $0x140] sm:$0xff] }
 0x27e   :  { %v1694_v33 = vadd.f32 %v1693_v28, %v1665_v62 }
 0x27f   :  { %v1643_v62 = vadd.f32 %v5521_v13, %v1614_v59 }
 0x280   :  { %v1723_v47 = vadd.f32 %v1722_v26, %v1694_v33 }
 0x283   :  { %v1666_v3 = vpop.f32.mrf.mxu3 }
 0x284   :  { %v1667_v42 = vadd.f32 %v1666_v3, %v1638_v37  ;;  %v1319_v3 = vpop.permute.xlu1 %1318 }
 0x285   :  { %v1532_v55 = vadd.f32 %v5326_v25, %v1319_v3  ;;  %v1729_v25 = vpop.f32.mrf.mxu1 }
 0x286   :  { %v1696_v53 = vadd.f32 %v1695_v2, %v1667_v42  ;;  %v4353_v42 = vld [vmem:[%s5891_s4 + $0x2e0] sm:$0xff] }
 0x288   :  { %v1725_v12 = vadd.f32 %v1724_v8, %v1696_v53 }
 0x28b   :  { %v1669_v15 = vpop.f32.mrf.mxu3 }
 0x293   :  { %v1671_v38 = vpop.f32.mrf.mxu3 }
 0x294   :  { %v1672_v8 = vadd.f32 %v1671_v38, %v1643_v62 }
 0x2ae   :  { %v1746_v34 = vpop.f32.mrf.mxu2 }
 0x2af   :  { %v1747_v6 = vadd.f32 %v1746_v34, %v1718_v49  ;;  %v4348_v49 = vld [vmem:[%s5891_s4 + $0x2b8] sm:$0xff] }
 0x2b0   :  { %v4356_v34 = vld [vmem:[%s5891_s4 + $0x2f8] sm:$0xff] }
 0x2b1   :  { %v1766_v7 = vmax.f32 %v1747_v6, 0.0  ;;  %v1670_v6 = vadd.f32 %v1669_v15, %v1641_v54 }
 0x2b3   :  { %1790 = vst [vmem:[#allocation3 + $0x30] sm:$0xf] %v1766_v7  ;;  %v1792_v24 = vrot.slane %v1766_v7, 4 }
 0x2b5   :  { %1794 = vst [vmem:[#allocation3] sm:$0xf] %v1792_v24 }
 0x2b6   :  { %v1748_v9 = vpop.f32.mrf.mxu2 }
 0x2b7   :  { %v1749_v10 = vadd.f32 %v1748_v9, %v1720_v21  ;;  %v1699_v21 = vadd.f32 %v1698_v41, %v1670_v6  ;;  %v1700_v9 = vpop.f32.mrf.mxu0 }
 0x2b8   :  { %v1701_v17 = vadd.f32 %v1700_v9, %v1672_v8  ;;  %v4341_v9 = vld [vmem:[%s5891_s4 + $0x280] sm:$0xff] }
 0x2b9   :  { %v1767_v58 = vmax.f32 %v1749_v10, 0.0  ;;  %v4346_v10 = vld [vmem:[%s5891_s4 + $0x2a8] sm:$0xff] }
 0x2ba   :  { %v1830_v4 = vld [vmem:[#allocation3 + $0x30] sm:$0xff] }
 0x2bb   :  { %1795 = vst [vmem:[#allocation3 + $0x58] sm:$0xf] %v1767_v58  ;;  %v1797_v46 = vrot.slane %v1767_v58, 4  ;;  %v1846_v1 = vpack.c.bf16 %v1830_v4, %v1830_v4  ;;  %v1728_v58 = vadd.f32 %v1727_v5, %v1699_v21  ;;  %v1617_v4 = vadd.f32 %v5494_v14, %v1588_v63  ;;  %v4363_v14 = vld [vmem:[%s5891_s4 + $0x330] sm:$0xff] }
 0x2bc   :  { %v1831_v24 = vld [vmem:[#allocation3] sm:$0xff] }
 0x2bd   :  { %1799 = vst [vmem:[#allocation3 + $0x18] sm:$0xf] %v1797_v46  ;;  %2894 = vmatmul.bf16.vlgmr.msra.gmra.mxu3 %v1846_v1  ;;  %v1847_v13 = vpack.c.bf16 %v1831_v24, %v1831_v24  ;;  %v4345_v46 = vld [vmem:[%s5891_s4 + $0x2a0] sm:$0xff]  ;;  %v1561_v1 = vadd.f32 %v5385_v18, %v1532_v55  ;;  %v1646_v0 = vadd.f32 %v5556_v48, %v1617_v4  ;;  %v4302_v18 = vld [vmem:[%s5891_s4 + $0x148] sm:$0xff]  ;;  %v4380_v55 = vld [vmem:[%s5891_s4 + $0x3b8] sm:$0xff] }
 0x2be   :  { %2951 = vmatpush.bf16.msra.mxu3 %v4308_v60  ;;  %v1751_v31 = vpop.f32.mrf.mxu2  ;;  %v4362_v48 = vld [vmem:[%s5891_s4 + $0x328] sm:$0xff] }
 0x2bf   :  { %v1752_v20 = vadd.f32 %v1751_v31, %v1723_v47  ;;  %v1674_v47 = vpop.f32.mrf.mxu3  ;;  %v1703_v53 = vpop.f32.mrf.mxu0  ;;  %v4350_v24 = vld [vmem:[%s5891_s4 + $0x2c8] sm:$0xff] }
 0x2c1   :  { %v1768_v28 = vmax.f32 %v1752_v20, 0.0  ;;  %v1590_v20 = vadd.f32 %v5498_v51, %v1561_v1 }
 0x2c2   :  { %2952 = vmatpush.bf16.msra.mxu3 %v4307_v40  ;;  %v1832_v35 = vld [vmem:[#allocation3 + $0x58] sm:$0xff] }
 0x2c3   :  { %1800 = vst [vmem:[#allocation3 + $0x50] sm:$0xf] %v1768_v28  ;;  %v1802_v22 = vrot.slane %v1768_v28, 4  ;;  %v1848_v52 = vpack.c.bf16 %v1832_v35, %v1832_v35  ;;  %v4352_v28 = vld [vmem:[%s5891_s4 + $0x2d8] sm:$0xff]  ;;  %v1730_v35 = vadd.f32 %v1729_v25, %v1701_v17  ;;  %v4337_v25 = vld [vmem:[%s5891_s4 + $0x260] sm:$0xff] }
 0x2c4   :  { %v1833_v16 = vld [vmem:[#allocation3 + $0x18] sm:$0xff] }
 0x2c5   :  { %1804 = vst [vmem:[#allocation3 + $0x68] sm:$0xf] %v1802_v22  ;;  %2920 = vmatmul.bf16.vlgmr.msra.gmra.mxu0 %v1848_v52  ;;  %v1849_v26 = vpack.c.bf16 %v1833_v16, %v1833_v16  ;;  %v4343_v22 = vld [vmem:[%s5891_s4 + $0x290] sm:$0xff]  ;;  %v1619_v52 = vadd.f32 %v5519_v39, %v1590_v20  ;;  %v4361_v16 = vld [vmem:[%s5891_s4 + $0x320] sm:$0xff]  ;;  %v4336_v17 = vld [vmem:[%s5891_s4 + $0x258] sm:$0xff] }
 0x2c6   :  { %2953 = vmatpush.bf16.msra.mxu3 %v4306_v19  ;;  %3016 = vmatpush.bf16.msra.mxu0 %v4348_v49  ;;  %v1753_v27 = vpop.f32.mrf.mxu2  ;;  %v1675_v19 = vadd.f32 %v1674_v47, %v1646_v0  ;;  %v4357_v0 = vld [vmem:[%s5891_s4 + $0x300] sm:$0xff] }
 0x2c7   :  { %v1754_v7 = vadd.f32 %v1753_v27, %v1725_v12  ;;  %2933 = vmatmul.bf16.vlgmr.msrb.gmra.mxu1 %v1849_v26  ;;  %v4351_v12 = vld [vmem:[%s5891_s4 + $0x2d0] sm:$0xff]  ;;  %v1648_v39 = vadd.f32 %v5588_v61, %v1619_v52  ;;  %v1676_v27 = vpop.f32.mrf.mxu3  ;;  %v4360_v61 = vld [vmem:[%s5891_s4 + $0x318] sm:$0xff]  ;;  %v1705_v63 = vpop.f32.mrf.mxu0 }
 0x2c8   :  { %3029 = vmatpush.bf16.msrb.mxu1 %v4356_v34  ;;  %v1732_v34 = vpop.f32.mrf.mxu1  ;;  %v1704_v26 = vadd.f32 %v1703_v53, %v1675_v19  ;;  %v4385_v53 = vld [vmem:[%s5891_s4 + $0x3e0] sm:$0xff]  ;;  %v3099_v52 = vld [vmem:[%s5893_s5 + $0x18] sm:$0xff] }
 0x2c9   :  { %v1769_v2 = vmax.f32 %v1754_v7, 0.0  ;;  %v1677_v62 = vadd.f32 %v1676_v27, %v1648_v39  ;;  %v4333_v19 = vld [vmem:[%s5891_s4 + $0x240] sm:$0xff]  ;;  %v4370_v39 = vld [vmem:[%s5891_s4 + $0x368] sm:$0xff] }
 0x2ca   :  { %2954 = vmatpush.bf16.msra.mxu3 %v4305_v43  ;;  %3017 = vmatpush.bf16.msra.mxu0 %v4347_v36  ;;  %v1834_v45 = vld [vmem:[#allocation3 + $0x50] sm:$0xff]  ;;  %v4342_v36 = vld [vmem:[%s5891_s4 + $0x288] sm:$0xff]  ;;  %v1733_v21 = vadd.f32 %v1732_v34, %v1704_v26  ;;  %v4373_v26 = vld [vmem:[%s5891_s4 + $0x380] sm:$0xff] }
 0x2cb   :  { %1805 = vst [vmem:[#allocation3 + $0x8] sm:$0xf] %v1769_v2  ;;  %v1807_v33 = vrot.slane %v1769_v2, 4  ;;  %v1850_v37 = vpack.c.bf16 %v1834_v45, %v1834_v45  ;;  %v3098_v34 = vld [vmem:[%s5893_s5 + $0x10] sm:$0xff]  ;;  %v4381_v27 = vld [vmem:[%s5891_s4 + $0x3c0] sm:$0xff] }
 0x2cc   :  { %3030 = vmatpush.bf16.msrb.mxu1 %v4355_v56  ;;  %v1835_v6 = vld [vmem:[#allocation3 + $0x68] sm:$0xff]  ;;  %v4339_v56 = vld [vmem:[%s5891_s4 + $0x270] sm:$0xff] }
 0x2cd   :  { %1809 = vst [vmem:[#allocation3 + $0x48] sm:$0xf] %v1807_v33  ;;  %2907 = vmatmul.bf16.vlgmr.msrb.gmra.mxu3 %v1847_v13  ;;  %2946 = vmatmul.bf16.vlgmr.msrb.gmra.mxu2 %v1850_v37  ;;  %v1851_v7 = vpack.c.bf16 %v1835_v6, %v1835_v6  ;;  %v4349_v33 = vld [vmem:[%s5891_s4 + $0x2c0] sm:$0xff]  ;;  %v1706_v13 = vadd.f32 %v1705_v63, %v1677_v62  ;;  %v3097_v6 = vld [vmem:[%s5893_s5 + $0x8] sm:$0xff] }
 0x2ce   :  { %2955 = vmatpush.bf16.msra.mxu3 %v4304_v11  ;;  %3018 = vmatpush.bf16.msra.mxu0 %v4346_v10  ;;  %v1756_v60 = vpop.f32.mrf.mxu2  ;;  %v4338_v11 = vld [vmem:[%s5891_s4 + $0x268] sm:$0xff]  ;;  %v4359_v10 = vld [vmem:[%s5891_s4 + $0x310] sm:$0xff]  ;;  %v4365_v62 = vld [vmem:[%s5891_s4 + $0x340] sm:$0xff] }
 0x2cf   :  { %v1757_v15 = vadd.f32 %v1756_v60, %v1728_v58  ;;  %3042 = vmatpush.bf16.msrb.mxu2 %v4364_v29  ;;  %v4388_v29 = vld [vmem:[%s5891_s4 + $0x3f8] sm:$0xff]  ;;  %v4358_v60 = vld [vmem:[%s5891_s4 + $0x308] sm:$0xff] }
 0x2d0   :  { %3031 = vmatpush.bf16.msrb.mxu1 %v4354_v23  ;;  %v1734_v23 = vpop.f32.mrf.mxu1 }
 0x2d1   :  { %v1770_v31 = vmax.f32 %v1757_v15, 0.0  ;;  %v1735_v1 = vadd.f32 %v1734_v23, %v1706_v13 }
 0x2d2   :  { %2956 = vmatpush.bf16.msra.mxu3 %v4303_v44  ;;  %3019 = vmatpush.bf16.msra.mxu0 %v4345_v46  ;;  %v1836_v40 = vld [vmem:[#allocation3 + $0x8] sm:$0xff]  ;;  %v4379_v44 = vld [vmem:[%s5891_s4 + $0x3b0] sm:$0xff] }
 0x2d3   :  { %1810 = vst [vmem:[#allocation3 + $0x40] sm:$0xf] %v1770_v31  ;;  %v1812_v41 = vrot.slane %v1770_v31, 4  ;;  %3043 = vmatpush.bf16.msrb.mxu2 %v4363_v14  ;;  %v1852_v50 = vpack.c.bf16 %v1836_v40, %v1836_v40  ;;  %v4387_v14 = vld [vmem:[%s5891_s4 + $0x3f0] sm:$0xff]  ;;  %v4378_v31 = vld [vmem:[%s5891_s4 + $0x3a8] sm:$0xff] }
 0x2d4   :  { %3032 = vmatpush.bf16.msrb.mxu1 %v4353_v42  ;;  %v1837_v54 = vld [vmem:[#allocation3 + $0x48] sm:$0xff] }
 0x2d5   :  { %1814 = vst [vmem:[#allocation3 + $0x20] sm:$0xf] %v1812_v41  ;;  %2972 = vmatmul.bf16.vlgmr.msrb.gmra.mxu0 %v1852_v50  ;;  %v1853_v51 = vpack.c.bf16 %v1837_v54, %v1837_v54  ;;  %v4386_v40 = vld [vmem:[%s5891_s4 + $0x3e8] sm:$0xff]  ;;  %v4335_v50 = vld [vmem:[%s5891_s4 + $0x250] sm:$0xff] }
 0x2d6   :  { %2957 = vmatpush.bf16.msra.mxu3 %v4302_v18  ;;  %3020 = vmatpush.bf16.msra.mxu0 %v4344_v57  ;;  %v1758_v49 = vpop.f32.mrf.mxu2  ;;  %v4334_v54 = vld [vmem:[%s5891_s4 + $0x248] sm:$0xff] }
 0x2d7   :  { %v1759_v5 = vadd.f32 %v1758_v49, %v1730_v35  ;;  %3044 = vmatpush.bf16.msrb.mxu2 %v4362_v48  ;;  %2985 = vmatmul.bf16.vlgmr.msra.gmra.mxu1 %v1853_v51  ;;  %v4377_v48 = vld [vmem:[%s5891_s4 + $0x3a0] sm:$0xff]  ;;  %v4384_v35 = vld [vmem:[%s5891_s4 + $0x3d8] sm:$0xff]  ;;  %v4375_v51 = vld [vmem:[%s5891_s4 + $0x390] sm:$0xff] }
 0x2d8   :  { %3033 = vmatpush.bf16.msrb.mxu1 %v4352_v28  ;;  %v4376_v28 = vld [vmem:[%s5891_s4 + $0x398] sm:$0xff] }
 0x2d9   :  { %v1771_v38 = vmax.f32 %v1759_v5, 0.0  ;;  %v4372_v49 = vld [vmem:[%s5891_s4 + $0x378] sm:$0xff] }
 0x2da   :  { %2958 = vmatpush.bf16.msra.mxu3 %v4301_v32  ;;  %3021 = vmatpush.bf16.msra.mxu0 %v4343_v22  ;;  %v1838_v43 = vld [vmem:[#allocation3 + $0x40] sm:$0xff]  ;;  %v4383_v32 = vld [vmem:[%s5891_s4 + $0x3d0] sm:$0xff] }
 0x2db   :  { %1815 = vst [vmem:[#allocation3 + $0x10] sm:$0xf] %v1771_v38  ;;  %v1817_v59 = vrot.slane %v1771_v38, 4  ;;  %3045 = vmatpush.bf16.msrb.mxu2 %v4361_v16  ;;  %v1854_v3 = vpack.c.bf16 %v1838_v43, %v1838_v43  ;;  %v4371_v16 = vld [vmem:[%s5891_s4 + $0x370] sm:$0xff]  ;;  %v3096_v38 = vld [vmem:[%s5893_s5] sm:$0xff] }
 0x2dc   :  { %3034 = vmatpush.bf16.msrb.mxu1 %v4351_v12  ;;  %v1839_v22 = vld [vmem:[#allocation3 + $0x20] sm:$0xff]  ;;  %v4382_v12 = vld [vmem:[%s5891_s4 + $0x3c8] sm:$0xff] }
 0x2dd   :  { %1819 = vst [vmem:[#allocation3 + $0x38] sm:$0xf] %v1817_v59  ;;  %2959 = vmatmul.bf16.vlgmr.msra.gmra.mxu3 %v1851_v7  ;;  %2998 = vmatmul.bf16.vlgmr.msra.gmra.mxu2 %v1854_v3  ;;  %v1855_v5 = vpack.c.bf16 %v1839_v22, %v1839_v22  ;;  %v4369_v7 = vld [vmem:[%s5891_s4 + $0x360] sm:$0xff] }
 0x2de   :  { %3003 = vmatpush.bf16.msrb.mxu3 %v4340_v30  ;;  %3022 = vmatpush.bf16.msra.mxu0 %v4342_v36  ;;  %v1761_v2 = vpop.f32.mrf.mxu2  ;;  %v4374_v30 = vld [vmem:[%s5891_s4 + $0x388] sm:$0xff]  ;;  %v3094_v36 = vld [vmem:[%s5894_s7] sm:$0x1] }
 0x2df   :  { %v1762_v45 = vadd.f32 %v1761_v2, %v1733_v21  ;;  %3046 = vmatpush.bf16.msrb.mxu2 %v4360_v61  ;;  %v4368_v61 = vld [vmem:[%s5891_s4 + $0x358] sm:$0xff]  ;;  %v4366_v21 = vld [vmem:[%s5891_s4 + $0x348] sm:$0xff] }
 0x2e0   :  { %3035 = vmatpush.bf16.msrb.mxu1 %v4350_v24  ;;  %v4367_v24 = vld [vmem:[%s5891_s4 + $0x350] sm:$0xff] }
 0x2e1   :  { %v1772_v37 = vmax.f32 %v1762_v45, 0.0 }
 0x2e2   :  { %3004 = vmatpush.bf16.msrb.mxu3 %v4339_v56  ;;  %3023 = vmatpush.bf16.msra.mxu0 %v4341_v9  ;;  %v1840_v58 = vld [vmem:[#allocation3 + $0x10] sm:$0xff]  ;;  %v4396_v9 = vld [vmem:[%s5892_s8] ss:$0 sm:$0xff] }
 0x2e3   :  { %1820 = vst [vmem:[#allocation3 + $0x60] sm:$0xf] %v1772_v37  ;;  %v1822_v8 = vrot.slane %v1772_v37, 4  ;;  %3047 = vmatpush.bf16.msrb.mxu2 %v4359_v10  ;;  %v1856_v4 = vpack.c.bf16 %v1840_v58, %v1840_v58  ;;  %3135 = vrot.lane.b32.xlu0 %v4396_v9, %s4432_s21 }
 0x2e4   :  { %3036 = vmatpush.bf16.msrb.mxu1 %v4349_v33  ;;  %v1841_v46 = vld [vmem:[#allocation3 + $0x38] sm:$0xff] }
 0x2e5   :  { %1824 = vst [vmem:[#allocation3 + $0x70] sm:$0xf] %v1822_v8  ;;  %3024 = vmatmul.bf16.vlgmr.msra.gmra.mxu0 %v1856_v4  ;;  %v1857_v15 = vpack.c.bf16 %v1841_v46, %v1841_v46 }
 0x2e6   :  { %3005 = vmatpush.bf16.msrb.mxu3 %v4338_v11  ;;  %3068 = vmatpush.bf16.msrb.mxu0 %v4380_v55  ;;  %v1763_v47 = vpop.f32.mrf.mxu2 }
 0x2e7   :  { %v1764_v42 = vadd.f32 %v1763_v47, %v1735_v1  ;;  %3048 = vmatpush.bf16.msrb.mxu2 %v4358_v60  ;;  %3037 = vmatmul.bf16.vlgmr.msrb.gmra.mxu1 %v1857_v15 }
 0x2e8   :  { %3081 = vmatpush.bf16.msra.mxu1 %v4388_v29 }
 0x2e9   :  { %v1773_v18 = vmax.f32 %v1764_v42, 0.0 }
 0x2ea   :  { %3006 = vmatpush.bf16.msrb.mxu3 %v4337_v25  ;;  %3069 = vmatpush.bf16.msrb.mxu0 %v4379_v44  ;;  %v1842_v57 = vld [vmem:[#allocation3 + $0x60] sm:$0xff] }
 0x2eb   :  { %1825 = vst [vmem:[#allocation3 + $0x78] sm:$0xf] %v1773_v18  ;;  %v1827_v20 = vrot.slane %v1773_v18, 4  ;;  %3049 = vmatpush.bf16.msrb.mxu2 %v4357_v0  ;;  %v1858_v41 = vpack.c.bf16 %v1842_v57, %v1842_v57 }
 0x2ec   :  { %3082 = vmatpush.bf16.msra.mxu1 %v4387_v14  ;;  %v1843_v63 = vld [vmem:[#allocation3 + $0x70] sm:$0xff] }
 0x2ed   :  { %1829 = vst [vmem:[#allocation3 + $0x28] sm:$0xf] %v1827_v20  ;;  %v1859_v2 = vpack.c.bf16 %v1843_v63, %v1843_v63 }
 0x2ee   :  { %3007 = vmatpush.bf16.msrb.mxu3 %v4336_v17  ;;  %3070 = vmatpush.bf16.msrb.mxu0 %v4378_v31 }
 0x2ef   :  { %3050 = vmatmul.bf16.vlgmr.msrb.gmra.mxu2 %v1858_v41 }
 0x2f0   :  { %3083 = vmatpush.bf16.msra.mxu1 %v4386_v40  ;;  %3118 = vmatpush.msra.mxu2 %v3099_v52 }
 0x2f2   :  { %3008 = vmatpush.bf16.msrb.mxu3 %v4335_v50  ;;  %3071 = vmatpush.bf16.msrb.mxu0 %v4377_v48  ;;  %v1844_v43 = vld [vmem:[#allocation3 + $0x78] sm:$0xff] }
 0x2f3   :  { %3119 = vmatpush.msra.mxu2 %v3098_v34  ;;  %v1860_v3 = vpack.c.bf16 %v1844_v43, %v1844_v43 }
 0x2f4   :  { %3084 = vmatpush.bf16.msra.mxu1 %v4385_v53  ;;  %v1845_v59 = vld [vmem:[#allocation3 + $0x28] sm:$0xff] }
 0x2f5   :  { %3120 = vmatpush.msra.mxu2 %v3097_v6  ;;  %v1861_v56 = vpack.c.bf16 %v1845_v59, %v1845_v59 }
 0x2f6   :  { %3009 = vmatpush.bf16.msrb.mxu3 %v4334_v54  ;;  %3072 = vmatpush.bf16.msrb.mxu0 %v4376_v28 }
 0x2f7   :  { %3121 = vmatpush.msra.mxu2 %v3096_v38 }
 0x2f8   :  { %3085 = vmatpush.bf16.msra.mxu1 %v4384_v35 }
 0x2f9   :  { %3232 = vmatpush.msrb.mxu2 %v3099_v52 }
 0x2fa   :  { %3010 = vmatpush.bf16.msrb.mxu3 %v4333_v19  ;;  %3073 = vmatpush.bf16.msrb.mxu0 %v4375_v51 }
 0x2fb   :  { %3233 = vmatpush.msrb.mxu2 %v3098_v34 }
 0x2fc   :  { %3086 = vmatpush.bf16.msra.mxu1 %v4383_v32 }
 0x2fd   :  { %3011 = vmatmul.bf16.vlgmr.msrb.gmra.mxu3 %v1855_v5  ;;  %3234 = vmatpush.msrb.mxu2 %v3097_v6 }
 0x2fe   :  { %3055 = vmatpush.bf16.msra.mxu3 %v4372_v49  ;;  %3074 = vmatpush.bf16.msrb.mxu0 %v4374_v30 }
 0x2ff   :  { %4194 = vmatmul.msk.f32.vlgmr.msra.gmra.mxu2 %vm3102_vm2, %v3094_v36 }
 0x300   :  { %3087 = vmatpush.bf16.msra.mxu1 %v4382_v12  ;;  %3235 = vmatpush.msrb.mxu2 %v3096_v38  ;;  %v4397_v12 = vld [vmem:[%s5895_s6] ss:$0 sm:$0xff] }
 0x302   :  { %3056 = vmatpush.bf16.msra.mxu3 %v4371_v16  ;;  %3075 = vmatpush.bf16.msrb.mxu0 %v4373_v26 }
 0x304   :  { %3088 = vmatpush.bf16.msra.mxu1 %v4381_v27 }
 0x305   :  { %3076 = vmatmul.bf16.vlgmr.msrb.gmra.mxu0 %v1860_v3 }
 0x306   :  { %3057 = vmatpush.bf16.msra.mxu3 %v4370_v39 }
 0x307   :  { %3089 = vmatmul.bf16.vlgmr.msra.gmra.mxu1 %v1861_v56 }
 0x30a   :  { %3058 = vmatpush.bf16.msra.mxu3 %v4369_v7 }
 0x30e   :  { %3059 = vmatpush.bf16.msra.mxu3 %v4368_v61 }
 0x312   :  { %3060 = vmatpush.bf16.msra.mxu3 %v4367_v24 }
 0x316   :  { %3061 = vmatpush.bf16.msra.mxu3 %v4366_v21 }
 0x31a   :  { %3062 = vmatpush.bf16.msra.mxu3 %v4365_v62 }
 0x31d   :  { %3063 = vmatmul.bf16.vlgmr.msra.gmra.mxu3 %v1859_v2 }
 0x31e   :  { %3176 = vmatpush.msrb.mxu3 %v3099_v52 }
 0x320   :  { %3177 = vmatpush.msrb.mxu3 %v3098_v34 }
 0x322   :  { %3178 = vmatpush.msrb.mxu3 %v3097_v6 }
 0x324   :  { %3179 = vmatpush.msrb.mxu3 %v3096_v38 }
 0x326   :  { %3288 = vmatpush.msra.mxu3 %v3099_v52 }
 0x328   :  { %3289 = vmatpush.msra.mxu3 %v3098_v34 }
 0x32a   :  { %3290 = vmatpush.msra.mxu3 %v3097_v6  ;;  %v3100_v6 = vld [vmem:[%s5895_s6] sm:$0x1] }
 0x32c   :  { %3291 = vmatpush.msra.mxu3 %v3096_v38 }
 0x340   :  { %v2895_v45 = vpop.f32.mrf.mxu3 }
 0x342   :  { %v2921_v11 = vpop.f32.mrf.mxu0 }
 0x344   :  { %v2934_v10 = vpop.f32.mrf.mxu1 }
 0x348   :  { %v2897_v55 = vpop.f32.mrf.mxu3 }
 0x34a   :  { %v2923_v33 = vpop.f32.mrf.mxu0 }
 0x34c   :  { %v2936_v13 = vpop.f32.mrf.mxu1 }
 0x350   :  { %v2908_v37 = vpop.f32.mrf.mxu3  ;;  %v2947_v29 = vpop.f32.mrf.mxu2 }
 0x351   :  { %v2909_v23 = vadd.f32 %v2908_v37, %v2895_v45 }
 0x352   :  { %v2973_v58 = vpop.f32.mrf.mxu0 }
 0x353   :  { %v2922_v8 = vadd.f32 %v2921_v11, %v2909_v23 }
 0x354   :  { %v2986_v4 = vpop.f32.mrf.mxu1 }
 0x355   :  { %v2935_v25 = vadd.f32 %v2934_v10, %v2922_v8  ;;  %v3136_v63 = vpop.permute.xlu0 %3135 }
 0x357   :  { %v2948_v20 = vadd.f32 %v2947_v29, %v2935_v25 }
 0x358   :  { %v2910_v60 = vpop.f32.mrf.mxu3  ;;  %v2949_v44 = vpop.f32.mrf.mxu2 }
 0x35a   :  { %v2975_v46 = vpop.f32.mrf.mxu0 }
 0x35c   :  { %v2988_v1 = vpop.f32.mrf.mxu1 }
 0x360   :  { %v2960_v15 = vpop.f32.mrf.mxu3  ;;  %v2999_v14 = vpop.f32.mrf.mxu2 }
 0x361   :  { %v2961_v50 = vadd.f32 %v2960_v15, %v2948_v20 }
 0x362   :  { %v3025_v47 = vpop.f32.mrf.mxu0 }
 0x363   :  { %v2974_v54 = vadd.f32 %v2973_v58, %v2961_v50 }
 0x364   :  { %v3038_v42 = vpop.f32.mrf.mxu1 }
 0x365   :  { %v2987_v35 = vadd.f32 %v2986_v4, %v2974_v54 }
 0x367   :  { %v3000_v49 = vadd.f32 %v2999_v14, %v2987_v35 }
 0x368   :  { %v2962_v17 = vpop.f32.mrf.mxu3  ;;  %v3001_v0 = vpop.f32.mrf.mxu2 }
 0x36a   :  { %v3027_v31 = vpop.f32.mrf.mxu0 }
 0x36c   :  { %v3040_v18 = vpop.f32.mrf.mxu1 }
 0x372   :  { %v3051_v40 = vpop.f32.mrf.mxu2 }
 0x37a   :  { %v3053_v57 = vpop.f32.mrf.mxu2 }
 0x380   :  { %v3012_v41 = vpop.f32.mrf.mxu3 }
 0x381   :  { %v3013_v32 = vadd.f32 %v3012_v41, %v3000_v49 }
 0x382   :  { %v3077_v48 = vpop.f32.mrf.mxu0  ;;  %v3123_v39 = vpop.f32.mrf.mxu2 }
 0x383   :  { %v3026_v22 = vadd.f32 %v3025_v47, %v3013_v32 }
 0x384   :  { %v3090_v53 = vpop.f32.mrf.mxu1 }
 0x385   :  { %v3039_v52 = vadd.f32 %v3038_v42, %v3026_v22 }
 0x387   :  { %v3052_v5 = vadd.f32 %v3051_v40, %v3039_v52 }
 0x388   :  { %v3014_v28 = vpop.f32.mrf.mxu3 }
 0x38a   :  { %v3079_v19 = vpop.f32.mrf.mxu0 }
 0x38c   :  { %v3092_v51 = vpop.f32.mrf.mxu1 }
 0x3a0   :  { %v3064_v30 = vpop.f32.mrf.mxu3 }
 0x3a1   :  { %v3065_v16 = vadd.f32 %v3064_v30, %v3052_v5 }
 0x3a3   :  { %v3078_v34 = vadd.f32 %v3077_v48, %v3065_v16 }
 0x3a5   :  { %v3091_v26 = vadd.f32 %v3090_v53, %v3078_v34 }
 0x3a7   :  { %v3101_v38 = vadd.f32 %v3100_v6, %v3091_v26  ;;  %v5844_v27 = vadd.f32 %v4397_v12, %v3091_v26 }
 0x3a8   :  { %v3066_v43 = vpop.f32.mrf.mxu3 }
 0x3a9   :  { %v3126_v36 = vadd.f32 %v3123_v39, %v3101_v38 }
 0x3ab   :  { %4398 = vtanh.f32 %v3126_v36  ;;  %v3127_v7 = vsub.f32 0.0, %v3126_v36 }
 0x3ad   :  { %v3128_v3 = vmul.f32 1.442695, %v3127_v7 }
 0x3af   :  { %4400 = vpow2.f32 %v3128_v3 }
 0x3b1   :  { %v4399_v59 = vpop.eup %4398 }
 0x3b2   :  { %3140 = vrot.lane.b32.xlu2 %v4399_v59, %s4433_s24 }
 0x3b5   :  { %v4401_v56 = vpop.eup %4400 }
 0x3b6   :  { %v3130_v61 = vadd.f32 1.0, %v4401_v56 }
 0x3b8   :  { %4402 = vrcp.f32 %v3130_v61 }
 0x3be   :  { %v4403_v24 = vpop.eup %4402 }
 0x3bf   :  { %v3138_v2 = vmul.f32 %v4403_v24, %v3136_v63  ;;  %v3329_v63 = vld [vmem:[%s5896_s9 + $0x18] sm:$0xff] }
 0x3c0   :  { %3349 = vmatpush.msra.mxu2 %v3329_v63 }
 0x40c   :  { %v3141_v21 = vpop.permute.xlu2 %3140 }
 0x40d   :  { %v3143_v62 = vmul.f32 %v4403_v24, %v3141_v21 }
 0x40f   :  { %3145 = vrot.lane.b32.xlu1 %v3143_v62, %s4432_s21 }
 0x481   :  { %v3146_v9 = vpop.permute.xlu1 %3145 }
 0x482   :  { %v3148_v45 = vadd.f32 %v3146_v9, %v3138_v2  ;;  %v3328_v2 = vld [vmem:[%s5896_s9 + $0x10] sm:$0xff]  ;;  %v3327_v9 = vld [vmem:[%s5896_s9 + $0x8] sm:$0xff] }
 0x483   :  { %3350 = vmatpush.msra.mxu2 %v3328_v2 }
 0x484   :  { %4404 = vtanh.f32 %v3148_v45  ;;  %v3195_v1 = vrot.slane %v3148_v45, 7  ;;  %v3326_v45 = vld [vmem:[%s5896_s9] sm:$0xff] }
 0x485   :  { %3351 = vmatpush.msra.mxu2 %v3327_v9 }
 0x487   :  { %3352 = vmatpush.msra.mxu2 %v3326_v45 }
 0x48a   :  { %v4405_v11 = vpop.eup %4404 }
 0x48b   :  { %3151 = vrot.lane.b32.xlu2 %v4405_v11, %s4433_s24 }
 0x4e5   :  { %v3152_v10 = vpop.permute.xlu2 %3151 }
 0x4e6   :  { %v3154_v55 = vmul.f32 %v4403_v24, %v3152_v10 }
 0x4e8   :  { %3160 = vrot.lane.b32.xlu0 %v3154_v55, %s4432_s21 }
 0x55a   :  { %v3161_v33 = vpop.permute.xlu0 %3160 }
 0x55b   :  { %4195 = vmatmul.msk.f32.vlgmr.msrb.gmra.mxu3 %vm3102_vm2, %v3161_v33 }
 0x5de   :  { %v3181_v13 = vpop.f32.mrf.mxu3 }
 0x5df   :  { %v3185_v37 = vrot.slane %v3181_v13, 7  ;;  %v3330_v13 = vld [vmem:[%s5897_s10] sm:$0x1] }
 0x5e1   :  { %v3187_v29 = vadd.f32 %v3185_v37, %v5844_v27 }
 0x5e3   :  { %4406 = vtanh.f32 %v3187_v29  ;;  %v3188_v58 = vsub.f32 0.0, %v3187_v29 }
 0x5e5   :  { %v3189_v8 = vmul.f32 1.442695, %v3188_v58 }
 0x5e7   :  { %4408 = vpow2.f32 %v3189_v8 }
 0x5e9   :  { %v4407_v23 = vpop.eup %4406 }
 0x5ea   :  { %3199 = vrot.lane.b32.xlu1 %v4407_v23, %s4433_s24 }
 0x5ed   :  { %v4409_v4 = vpop.eup %4408 }
 0x5ee   :  { %v3191_v25 = vadd.f32 1.0, %v4409_v4 }
 0x5f0   :  { %4410 = vrcp.f32 %v3191_v25 }
 0x5f6   :  { %v4411_v60 = vpop.eup %4410 }
 0x5f7   :  { %v3197_v15 = vmul.f32 %v4411_v60, %v3195_v1 }
 0x65c   :  { %v3200_v44 = vpop.permute.xlu1 %3199 }
 0x65d   :  { %v3202_v46 = vmul.f32 %v4411_v60, %v3200_v44 }
 0x65f   :  { %3204 = vrot.lane.b32.xlu2 %v3202_v46, %s4432_s21 }
 0x6b9   :  { %v3205_v14 = vpop.permute.xlu2 %3204 }
 0x6ba   :  { %v3207_v47 = vadd.f32 %v3205_v14, %v3197_v15 }
 0x6bc   :  { %4412 = vtanh.f32 %v3207_v47  ;;  %v3251_v51 = vrot.slane %v3207_v47, 7 }
 0x6c2   :  { %v4413_v42 = vpop.eup %4412 }
 0x6c3   :  { %3210 = vrot.lane.b32.xlu0 %v4413_v42, %s4433_s24 }
 0x735   :  { %v3211_v17 = vpop.permute.xlu0 %3210 }
 0x736   :  { %v3213_v0 = vmul.f32 %v4411_v60, %v3211_v17 }
 0x738   :  { %v3215_v31 = vrot.slane %v3213_v0, 1 }
 0x73a   :  { %3216 = vrot.lane.b32.xlu1 %v3215_v31, %s4432_s21 }
 0x7ac   :  { %v3217_v18 = vpop.permute.xlu1 %3216 }
 0x7ad   :  { %4196 = vmatmul.msk.f32.vlgmr.msrb.gmra.mxu2 %vm3102_vm2, %v3217_v18 }
 0x830   :  { %v3237_v40 = vpop.f32.mrf.mxu2 }
 0x831   :  { %v3241_v57 = vrot.slane %v3237_v40, 6 }
 0x833   :  { %v3243_v20 = vadd.f32 %v3241_v57, %v5844_v27 }
 0x835   :  { %4414 = vtanh.f32 %v3243_v20  ;;  %v3244_v50 = vsub.f32 0.0, %v3243_v20 }
 0x837   :  { %v3245_v48 = vmul.f32 1.442695, %v3244_v50 }
 0x839   :  { %4416 = vpow2.f32 %v3245_v48 }
 0x83b   :  { %v4415_v41 = vpop.eup %4414 }
 0x83c   :  { %3255 = vrot.lane.b32.xlu2 %v4415_v41, %s4433_s24 }
 0x83f   :  { %v4417_v53 = vpop.eup %4416 }
 0x840   :  { %v3247_v54 = vadd.f32 1.0, %v4417_v53 }
 0x842   :  { %4418 = vrcp.f32 %v3247_v54 }
 0x848   :  { %v4419_v28 = vpop.eup %4418 }
 0x849   :  { %v3253_v49 = vmul.f32 %v4419_v28, %v3251_v51 }
 0x896   :  { %v3256_v35 = vpop.permute.xlu2 %3255 }
 0x897   :  { %v3258_v19 = vmul.f32 %v4419_v28, %v3256_v35 }
 0x899   :  { %3260 = vrot.lane.b32.xlu0 %v3258_v19, %s4432_s21 }
 0x90b   :  { %v3261_v32 = vpop.permute.xlu0 %3260 }
 0x90c   :  { %v3263_v22 = vadd.f32 %v3261_v32, %v3253_v49 }
 0x90e   :  { %4420 = vtanh.f32 %v3263_v22  ;;  %v3307_v61 = vrot.slane %v3263_v22, 7 }
 0x914   :  { %v4421_v52 = vpop.eup %4420 }
 0x915   :  { %3266 = vrot.lane.b32.xlu1 %v4421_v52, %s4433_s24 }
 0x987   :  { %v3267_v5 = vpop.permute.xlu1 %3266 }
 0x988   :  { %v3269_v30 = vmul.f32 %v4419_v28, %v3267_v5 }
 0x98a   :  { %v3271_v16 = vrot.slane %v3269_v30, 2 }
 0x98c   :  { %3272 = vrot.lane.b32.xlu2 %v3271_v16, %s4432_s21 }
 0x9e6   :  { %v3273_v34 = vpop.permute.xlu2 %3272 }
 0x9e7   :  { %4197 = vmatmul.msk.f32.vlgmr.msra.gmra.mxu3 %vm3102_vm2, %v3273_v34 }
 0xa6a   :  { %v3293_v12 = vpop.f32.mrf.mxu3 }
 0xa6b   :  { %v3297_v6 = vrot.slane %v3293_v12, 5 }
 0xa6d   :  { %v3299_v26 = vadd.f32 %v3297_v6, %v5844_v27 }
 0xa6f   :  { %4422 = vtanh.f32 %v3299_v26  ;;  %v3300_v38 = vsub.f32 0.0, %v3299_v26 }
 0xa71   :  { %v3301_v43 = vmul.f32 1.442695, %v3300_v38 }
 0xa73   :  { %4424 = vpow2.f32 %v3301_v43 }
 0xa75   :  { %v4423_v39 = vpop.eup %4422 }
 0xa76   :  { %3311 = vrot.lane.b32.xlu0 %v4423_v39, %s4433_s24 }
 0xa79   :  { %v4425_v36 = vpop.eup %4424 }
 0xa7a   :  { %v3303_v59 = vadd.f32 1.0, %v4425_v36 }
 0xa7c   :  { %4426 = vrcp.f32 %v3303_v59 }
 0xa82   :  { %v4427_v7 = vpop.eup %4426 }
 0xa83   :  { %v3309_v24 = vmul.f32 %v4427_v7, %v3307_v61 }
 0xae8   :  { %v3312_v3 = vpop.permute.xlu0 %3311 }
 0xae9   :  { %v3314_v56 = vmul.f32 %v4427_v7, %v3312_v3 }
 0xaeb   :  { %3316 = vrot.lane.b32.xlu1 %v3314_v56, %s4432_s21 }
 0xb5d   :  { %v3317_v21 = vpop.permute.xlu1 %3316 }
 0xb5e   :  { %v3319_v62 = vadd.f32 %v3317_v21, %v3309_v24 }
 0xb60   :  { %4428 = vtanh.f32 %v3319_v62 }
 0xb66   :  { %v4429_v27 = vpop.eup %4428 }
 0xb67   :  { %3322 = vrot.lane.b32.xlu2 %v4429_v27, %s4433_s24 }
 0xbc1   :  { %v3323_v11 = vpop.permute.xlu2 %3322 }
 0xbc2   :  { %v3325_v10 = vmul.f32 %v4427_v7, %v3323_v11 }
 0xbc4   :  { %v3332_v55 = vrot.slane %v3325_v10, 3 }
 0xbc6   :  { %3333 = vrot.lane.b32.xlu0 %v3332_v55, %s4432_s21 }
 0xc38   :  { %v3334_v33 = vpop.permute.xlu0 %3333 }
 0xc39   :  { %4198 = vmatmul.msk.f32.vlgmr.msra.gmra.mxu2 %vm3102_vm2, %v3334_v33 }
 0xcbc   :  { %v3354_v37 = vpop.f32.mrf.mxu2 }
 0xcbd   :  { %v3355_v29 = vadd.f32 %v3354_v37, %v3330_v13 }
 0xcbf   :  { %3357 = vst [vmem:[%s5898_s11] sm:$0x1] %v3355_v29 }

</bundles_post_ra>
